<compile_context>
chip_gen: v7x
topology: tpu7x:2x2x1
jax: 0.10.0
libtpu: 0.0.40
codegen_flags: <defaults>
</compile_context>

<pallas_src>
import functools

import jax
import jax.numpy as jnp
import numpy as np
from jax.experimental import pallas as pl
from jax.experimental.pallas import tpu as pltpu

LANE = 128
KSIZE = 4
STRIDE = 2


def conv_lout(lin, kernel_size, padding=0, stride=1, dilation=1):
    return (lin + 2 * padding - dilation * (kernel_size - 1) - 1) // stride + 1


def round_up(n, m):
    return ((n + m - 1) // m) * m


# ----------------------------------------------------------------------------
# Fused kernel: one grid step per batch block, everything VMEM-resident.
# ----------------------------------------------------------------------------
def _fused_forward_kernel(*refs, n_rest, L3, Bb):
    (xp1_ref, w1_ref, b1_ref, w2_ref, b2_ref, w3_ref, b3_ref,
     wf1_ref, bf1_ref) = refs[:9]
    rest_refs = refs[9:9 + 2 * n_rest]
    o_ref = refs[9 + 2 * n_rest]
    h1_s, h2_s, h3_s, hflat_s = refs[10 + 2 * n_rest:]

    K = w1_ref.shape[0]
    M2 = h2_s.shape[0]            # = L1 - (K-1): dense (stride-1) conv2 rows
    M3 = h3_s.shape[0]            # = M2 - 2*(K-1): dense (dilation-2) conv3 rows
    f32 = jnp.float32
    bf16 = jnp.bfloat16

    # ---- conv stages, unrolled over the (small, static) batch block ---------
    for b in range(Bb):
        # conv1: one tiny MXU push (K = 4 contraction), f32.
        xp = xp1_ref[b]                                          # (L1, K)
        h1 = jnp.dot(xp, w1_ref[...], preferred_element_type=f32)
        h1_s[...] = jnp.maximum(h1 + b1_ref[...], 0.0)           # (L1, C1)

        # conv2 computed densely at stride 1: each tap is a contiguous slice.
        p2 = jnp.concatenate([h1_s[pl.ds(k, M2), :] for k in range(K)], axis=-1)
        h2 = jnp.dot(p2.astype(bf16), w2_ref[...], preferred_element_type=f32)
        h2_s[...] = jnp.maximum(h2 + b2_ref[...], 0.0)           # (M2, C2)

        # conv3: the stride-2 input becomes dilation-2 taps over dense h2.
        p3 = jnp.concatenate([h2_s[pl.ds(2 * k, M3), :] for k in range(K)], axis=-1)
        h3 = jnp.dot(p3.astype(bf16), w3_ref[...], preferred_element_type=f32)
        h3_s[...] = jnp.maximum(h3 + b3_ref[...], 0.0)           # (M3, C3)

        # flatten + first FC as an accumulated contraction over the L3 true
        # rows (stride 4 in the dense buffer) -> no lane concat.
        acc = jnp.dot(h3_s[pl.ds(0, 1), :].astype(bf16), wf1_ref[0],
                      preferred_element_type=f32)
        for l in range(1, L3):
            acc = acc + jnp.dot(h3_s[pl.ds(4 * l, 1), :].astype(bf16),
                                wf1_ref[l], preferred_element_type=f32)
        hflat_s[pl.ds(b, 1), :] = acc                            # (1, P1)

    # ---- remaining FC stack, batched over the block (M = Bb) ----------------
    h = hflat_s[...] + bf1_ref[...]                              # (Bb, P1)
    if n_rest > 0:                                               # first layer was an fc -> ReLU
        h = jnp.maximum(h, 0.0)
    for i in range(n_rest):
        w_ref = rest_refs[2 * i]
        b_ref = rest_refs[2 * i + 1]
        h = jnp.dot(h.astype(bf16), w_ref[...], preferred_element_type=f32) + b_ref[...]
        if i < n_rest - 1:                                       # linear_out has no ReLU
            h = jnp.maximum(h, 0.0)

    o_ref[...] = h.astype(o_ref.dtype)                           # (Bb, out_pad), lane-dense


def _full_spec(arr):
    nd = arr.ndim
    return pl.BlockSpec(arr.shape, lambda i, _nd=nd: (0,) * _nd)


# ----------------------------------------------------------------------------
# One-time weight re-layout (hoisted out of the forward path).
# ----------------------------------------------------------------------------
def prepare_params(params):
    K = KSIZE
    C1 = params["w1"].shape[0]
    C2 = params["w2"].shape[0]
    C3 = params["w3"].shape[0]
    f32, bf16 = jnp.float32, jnp.bfloat16

    w1k = jnp.transpose(params["w1"][:, 0, :], (1, 0)).astype(f32)           # (K, C1)
    b1 = params["b1"].reshape(1, C1).astype(f32)
    w2r = jnp.transpose(params["w2"], (2, 1, 0)).reshape(K * C1, C2).astype(bf16)
    b2 = params["b2"].reshape(1, C2).astype(f32)
    w3r = jnp.transpose(params["w3"], (2, 1, 0)).reshape(K * C2, C3).astype(bf16)
    b3 = params["b3"].reshape(1, C3).astype(f32)

    layers = list(params["fcs"]) + [(params["w_out"], params["b_out"])]

    # First layer contracts the flattened (C3-major) activation: reshape its
    # weight to (L3, C3, n_out) so the kernel can accumulate per flatten-row.
    w0 = jnp.asarray(layers[0][0], f32)
    b0 = jnp.asarray(layers[0][1], f32)
    flat_dim, n0 = w0.shape
    L3 = flat_dim // C3
    P0 = round_up(n0, LANE)
    wf1 = w0.reshape(C3, L3, n0).transpose(1, 0, 2)                          # (L3, C3, n0)
    wf1 = jnp.pad(wf1, ((0, 0), (0, 0), (0, P0 - n0))).astype(bf16)
    bf1 = jnp.pad(b0, (0, P0 - n0)).reshape(1, P0).astype(f32)

    rest = []
    prev_pad = P0
    for (w, b) in layers[1:]:
        w = jnp.asarray(w, f32)
        b = jnp.asarray(b, f32)
        n_in, n_out = w.shape
        w = jnp.pad(w, ((0, prev_pad - n_in), (0, 0)))
        n_pad = round_up(n_out, LANE)
        w = jnp.pad(w, ((0, 0), (0, n_pad - n_out))).astype(bf16)
        b = jnp.pad(b, (0, n_pad - n_out)).reshape(1, n_pad).astype(f32)
        rest.append((w, b))
        prev_pad = n_pad

    return {"w1": w1k, "b1": b1, "w2": w2r, "b2": b2, "w3": w3r, "b3": b3,
            "wf1": wf1, "bf1": bf1, "rest": rest}


# ----------------------------------------------------------------------------
# Forward: input im2col + single pallas_call.
# ----------------------------------------------------------------------------
def simple_conv1d_forward(prepped, x, out_dim=2, batch_block=None):
    """x: (B, Tin) -> (B, out_dim), matching the PyTorch module."""
    B, Tin = x.shape
    K = KSIZE
    L1 = conv_lout(Tin, K, stride=STRIDE)
    L2 = conv_lout(L1, K, stride=STRIDE)
    L3 = conv_lout(L2, K, stride=STRIDE)
    M2 = L1 - (K - 1)             # dense conv2 rows
    M3 = M2 - 2 * (K - 1)         # dense conv3 rows

    assert STRIDE == 2, "dense-conv deferral assumes stride 2"
    assert 4 * (L3 - 1) + 1 <= M3, "dense-conv deferral would read past buffer"

    C1 = prepped["w1"].shape[1]
    C2 = prepped["w2"].shape[1]
    C3 = prepped["w3"].shape[1]
    assert prepped["wf1"].shape[0] == L3 and prepped["wf1"].shape[1] == C3

    f32 = jnp.float32
    x = x.astype(f32)
    # conv1 im2col on the raw (tiny) input only: xp1[b, l, k] = x[b, 2l + k]
    xp1 = jnp.stack([x[:, k:k + STRIDE * L1:STRIDE] for k in range(K)], axis=-1)

    Bb = B if batch_block is None else batch_block
    assert B % Bb == 0
    n_steps = B // Bb

    P1 = prepped["wf1"].shape[2]
    n_rest = len(prepped["rest"])
    out_pad = prepped["rest"][-1][0].shape[1] if n_rest else P1

    operands = [xp1, prepped["w1"], prepped["b1"], prepped["w2"], prepped["b2"],
                prepped["w3"], prepped["b3"], prepped["wf1"], prepped["bf1"]]
    in_specs = [pl.BlockSpec((Bb, L1, K), lambda i: (i, 0, 0))]
    for a in operands[1:]:
        in_specs.append(_full_spec(a))
    for (w, b) in prepped["rest"]:
        operands += [w, b]
        in_specs += [_full_spec(w), _full_spec(b)]

    kernel = functools.partial(_fused_forward_kernel, n_rest=n_rest, L3=L3, Bb=Bb)

    out = pl.pallas_call(
        kernel,
        out_shape=jax.ShapeDtypeStruct((B, out_pad), f32),
        grid=(n_steps,),
        in_specs=in_specs,
        out_specs=pl.BlockSpec((Bb, out_pad), lambda i: (i, 0)),
        scratch_shapes=[
            pltpu.VMEM((L1, C1), f32),
            pltpu.VMEM((M2, C2), f32),
            pltpu.VMEM((M3, C3), f32),
            pltpu.VMEM((Bb, P1), f32),
        ],
        compiler_params=pltpu.CompilerParams(
            dimension_semantics=("parallel",),
            vmem_limit_bytes=8 * 1024 * 1024,
        ),
    )(*operands)

    return out[:, :out_dim]


# ----------------------------------------------------------------------------
# Synthetic parameters (torch module shapes) and a pure-jnp reference.
# ----------------------------------------------------------------------------
def init_params(key, in_dim, hidden_dims):
    n_keys = 6 + 2 * len(hidden_dims) + 2
    keys = jax.random.split(key, n_keys)
    ki = iter(keys)

    def rnd(k, shape, fan_in):
        scale = 1.0 / np.sqrt(fan_in)
        return (jax.random.uniform(k, shape, jnp.float32) * 2.0 - 1.0) * scale

    params = {}
    params["w1"] = rnd(next(ki), (64, 1, 4), 1 * 4)
    params["b1"] = rnd(next(ki), (64,), 1 * 4)
    l1 = conv_lout(in_dim, 4, stride=2)
    params["w2"] = rnd(next(ki), (128, 64, 4), 64 * 4)
    params["b2"] = rnd(next(ki), (128,), 64 * 4)
    l2 = conv_lout(l1, 4, stride=2)
    params["w3"] = rnd(next(ki), (256, 128, 4), 128 * 4)
    params["b3"] = rnd(next(ki), (256,), 128 * 4)
    l3 = conv_lout(l2, 4, stride=2)

    dim = l3 * 256
    fcs = []
    for h in hidden_dims:
        w = rnd(next(ki), (dim, h), dim)
        b = rnd(next(ki), (h,), dim)
        fcs.append((w, b))
        dim = h
    params["fcs"] = fcs
    params["w_out"] = rnd(next(ki), (dim, 2), dim)
    params["b_out"] = rnd(next(ki), (2,), dim)
    return params


def im2col_1d(x, kernel_size, stride):
    B, C, L = x.shape
    Lout = (L - kernel_size) // stride + 1
    starts = jnp.arange(Lout) * stride
    gather = starts[:, None] + jnp.arange(kernel_size)[None]
    patches = x[:, :, gather]
    patches = jnp.transpose(patches, (0, 2, 1, 3))
    return patches.reshape(B, Lout, C * kernel_size), Lout


def reference_forward(params, x):
    def conv(xn, w, b, stride):
        B, Cin, L = xn.shape
        Cout, _, K = w.shape
        p, Lout = im2col_1d(xn, K, stride)
        y = p.reshape(B * Lout, Cin * K) @ w.reshape(Cout, Cin * K).T + b
        y = jnp.maximum(y, 0.0).reshape(B, Lout, Cout)
        return jnp.transpose(y, (0, 2, 1))

    B, Tin = x.shape
    h = x.reshape(B, 1, Tin)
    h = conv(h, params["w1"], params["b1"], 2)
    h = conv(h, params["w2"], params["b2"], 2)
    h = conv(h, params["w3"], params["b3"], 2)
    h = h.reshape(B, -1)
    for w, b in params["fcs"]:
        h = jnp.maximum(h @ w + b, 0.0)
    return h @ params["w_out"] + params["b_out"]


if __name__ == "__main__":
    B, Tin = 2, 64            # in_dim = 64 -> L1=31, L2=14, L3=6, flat dim=1536
    hidden_dims = (32,)

    key = jax.random.PRNGKey(0)
    kx, kp = jax.random.split(key)
    x = jax.random.normal(kx, (B, Tin), jnp.float32)
    params = init_params(kp, Tin, hidden_dims)

    # One-time weight re-layout (kept out of the per-call forward path).
    prepped = prepare_params(params)

    fwd = jax.jit(simple_conv1d_forward, static_argnames=("out_dim", "batch_block"))
    out = jax.block_until_ready(fwd(prepped, x, out_dim=2))
    assert out.shape == (B, 2), out.shape

    # f32 reference; kernel uses bf16 MXU operands with f32 accumulation.
    ref = jax.block_until_ready(reference_forward(params, x))
    np.testing.assert_allclose(np.asarray(out), np.asarray(ref), rtol=5e-2, atol=5e-2)

    print("KERNEL_OK")
</pallas_src>

<mosaic_0001>
module attributes {stable_mosaic.version = 11 : i64} {
  func.func @_fused_forward_kernel(%arg0: i32, %arg1: memref<2x31x4xf32, #tpu.memory_space<vmem>>, %arg2: memref<4x64xf32, #tpu.memory_space<vmem>>, %arg3: memref<1x64xf32, #tpu.memory_space<vmem>>, %arg4: memref<256x128xbf16, #tpu.memory_space<vmem>>, %arg5: memref<1x128xf32, #tpu.memory_space<vmem>>, %arg6: memref<512x256xbf16, #tpu.memory_space<vmem>>, %arg7: memref<1x256xf32, #tpu.memory_space<vmem>>, %arg8: memref<6x256x128xbf16, #tpu.memory_space<vmem>>, %arg9: memref<1x128xf32, #tpu.memory_space<vmem>>, %arg10: memref<128x128xbf16, #tpu.memory_space<vmem>>, %arg11: memref<1x128xf32, #tpu.memory_space<vmem>>, %arg12: memref<2x128xf32, #tpu.memory_space<vmem>>, %arg13: memref<31x64xf32, #tpu.memory_space<vmem>>, %arg14: memref<28x128xf32, #tpu.memory_space<vmem>>, %arg15: memref<22x256xf32, #tpu.memory_space<vmem>>, %arg16: memref<2x128xf32, #tpu.memory_space<vmem>>) attributes {dimension_semantics = [#tpu.dimension_semantics<parallel>], iteration_bounds = array<i64: 1>, scalar_prefetch = 0 : i64, scratch_operands = 4 : i64, tpu.core_type = #tpu.core_type<tc>, window_params = [{transform_indices = @transform_0, window_bounds = array<i64: 2, 31, 4>}, {pipeline_mode = #tpu.pipeline_mode<synchronous>, transform_indices = @transform_1, window_bounds = array<i64: 4, 64>}, {pipeline_mode = #tpu.pipeline_mode<synchronous>, transform_indices = @transform_2, window_bounds = array<i64: 1, 64>}, {pipeline_mode = #tpu.pipeline_mode<synchronous>, transform_indices = @transform_3, window_bounds = array<i64: 256, 128>}, {pipeline_mode = #tpu.pipeline_mode<synchronous>, transform_indices = @transform_4, window_bounds = array<i64: 1, 128>}, {pipeline_mode = #tpu.pipeline_mode<synchronous>, transform_indices = @transform_5, window_bounds = array<i64: 512, 256>}, {pipeline_mode = #tpu.pipeline_mode<synchronous>, transform_indices = @transform_6, window_bounds = array<i64: 1, 256>}, {pipeline_mode = #tpu.pipeline_mode<synchronous>, transform_indices = @transform_7, window_bounds = array<i64: 6, 256, 128>}, {pipeline_mode = #tpu.pipeline_mode<synchronous>, transform_indices = @transform_8, window_bounds = array<i64: 1, 128>}, {pipeline_mode = #tpu.pipeline_mode<synchronous>, transform_indices = @transform_9, window_bounds = array<i64: 128, 128>}, {pipeline_mode = #tpu.pipeline_mode<synchronous>, transform_indices = @transform_10, window_bounds = array<i64: 1, 128>}, {transform_indices = @transform_11, window_bounds = array<i64: 2, 128>}]} {
    %c0 = arith.constant 0 : index
    %c0_0 = arith.constant 0 : index
    %c0_1 = arith.constant 0 : index
    %0 = vector.load %arg1[%c0, %c0_0, %c0_1] : memref<2x31x4xf32, #tpu.memory_space<vmem>>, vector<1x31x4xf32>
    %1 = vector.shape_cast %0 : vector<1x31x4xf32> to vector<31x4xf32>
    %c0_2 = arith.constant 0 : index
    %c0_3 = arith.constant 0 : index
    %2 = vector.load %arg2[%c0_2, %c0_3] : memref<4x64xf32, #tpu.memory_space<vmem>>, vector<4x64xf32>
    %cst = arith.constant dense<0.000000e+00> : vector<31x64xf32>
    %3 = tpu.matmul %1, %2, %cst {dimension_numbers = #tpu.dot_dimension_numbers<[1], [0], [0], [1], [0, 0, 1, 1], [], []>} : vector<31x4xf32>, vector<4x64xf32>, vector<31x64xf32> -> vector<31x64xf32>
    %c0_4 = arith.constant 0 : index
    %c0_5 = arith.constant 0 : index
    %4 = vector.load %arg3[%c0_4, %c0_5] : memref<1x64xf32, #tpu.memory_space<vmem>>, vector<1x64xf32>
    %5 = vector.broadcast %4 : vector<1x64xf32> to vector<31x64xf32>
    %6 = arith.addf %3, %5 : vector<31x64xf32>
    %cst_6 = arith.constant 0.000000e+00 : f32
    %7 = vector.broadcast %cst_6 : f32 to vector<31x64xf32>
    %8 = arith.maximumf %6, %7 : vector<31x64xf32>
    %c0_7 = arith.constant 0 : index
    %c0_8 = arith.constant 0 : index
    %9 = vector.load %arg13[%c0_7, %c0_8] : memref<31x64xf32, #tpu.memory_space<vmem>>, vector<31x64xf32>
    tpu.vector_store %arg13[%c0_7, %c0_8], %8 {strides = array<i32>} : memref<31x64xf32, #tpu.memory_space<vmem>>, vector<31x64xf32>,
    %c0_9 = arith.constant 0 : index
    %c0_10 = arith.constant 0 : index
    %10 = vector.load %arg13[%c0_9, %c0_10] : memref<31x64xf32, #tpu.memory_space<vmem>>, vector<28x64xf32>
    %c1 = arith.constant 1 : index
    %c0_11 = arith.constant 0 : index
    %11 = vector.load %arg13[%c1, %c0_11] : memref<31x64xf32, #tpu.memory_space<vmem>>, vector<28x64xf32>
    %c2 = arith.constant 2 : index
    %c0_12 = arith.constant 0 : index
    %12 = vector.load %arg13[%c2, %c0_12] : memref<31x64xf32, #tpu.memory_space<vmem>>, vector<28x64xf32>
    %c3 = arith.constant 3 : index
    %c0_13 = arith.constant 0 : index
    %13 = vector.load %arg13[%c3, %c0_13] : memref<31x64xf32, #tpu.memory_space<vmem>>, vector<28x64xf32>
    %14 = tpu.concatenate %10, %11, %12, %13 in 1 : vector<28x64xf32>, vector<28x64xf32>, vector<28x64xf32>, vector<28x64xf32> -> vector<28x256xf32>
    %15 = arith.truncf %14 : vector<28x256xf32> to vector<28x256xbf16>
    %c0_14 = arith.constant 0 : index
    %c0_15 = arith.constant 0 : index
    %16 = vector.load %arg4[%c0_14, %c0_15] : memref<256x128xbf16, #tpu.memory_space<vmem>>, vector<256x128xbf16>
    %cst_16 = arith.constant dense<0.000000e+00> : vector<28x128xf32>
    %17 = tpu.matmul %15, %16, %cst_16 {dimension_numbers = #tpu.dot_dimension_numbers<[1], [0], [0], [1], [0, 0, 1, 1], [], []>} : vector<28x256xbf16>, vector<256x128xbf16>, vector<28x128xf32> -> vector<28x128xf32>
    %c0_17 = arith.constant 0 : index
    %c0_18 = arith.constant 0 : index
    %18 = vector.load %arg5[%c0_17, %c0_18] : memref<1x128xf32, #tpu.memory_space<vmem>>, vector<1x128xf32>
    %19 = vector.broadcast %18 : vector<1x128xf32> to vector<28x128xf32>
    %20 = arith.addf %17, %19 : vector<28x128xf32>
    %cst_19 = arith.constant 0.000000e+00 : f32
    %21 = vector.broadcast %cst_19 : f32 to vector<28x128xf32>
    %22 = arith.maximumf %20, %21 : vector<28x128xf32>
    %c0_20 = arith.constant 0 : index
    %c0_21 = arith.constant 0 : index
    %23 = vector.load %arg14[%c0_20, %c0_21] : memref<28x128xf32, #tpu.memory_space<vmem>>, vector<28x128xf32>
    tpu.vector_store %arg14[%c0_20, %c0_21], %22 {strides = array<i32>} : memref<28x128xf32, #tpu.memory_space<vmem>>, vector<28x128xf32>,
    %c0_22 = arith.constant 0 : index
    %c0_23 = arith.constant 0 : index
    %24 = vector.load %arg14[%c0_22, %c0_23] : memref<28x128xf32, #tpu.memory_space<vmem>>, vector<22x128xf32>
    %c2_24 = arith.constant 2 : index
    %c0_25 = arith.constant 0 : index
    %25 = vector.load %arg14[%c2_24, %c0_25] : memref<28x128xf32, #tpu.memory_space<vmem>>, vector<22x128xf32>
    %c4 = arith.constant 4 : index
    %c0_26 = arith.constant 0 : index
    %26 = vector.load %arg14[%c4, %c0_26] : memref<28x128xf32, #tpu.memory_space<vmem>>, vector<22x128xf32>
    %c6 = arith.constant 6 : index
    %c0_27 = arith.constant 0 : index
    %27 = vector.load %arg14[%c6, %c0_27] : memref<28x128xf32, #tpu.memory_space<vmem>>, vector<22x128xf32>
    %28 = tpu.concatenate %24, %25, %26, %27 in 1 : vector<22x128xf32>, vector<22x128xf32>, vector<22x128xf32>, vector<22x128xf32> -> vector<22x512xf32>
    %29 = arith.truncf %28 : vector<22x512xf32> to vector<22x512xbf16>
    %c0_28 = arith.constant 0 : index
    %c0_29 = arith.constant 0 : index
    %30 = vector.load %arg6[%c0_28, %c0_29] : memref<512x256xbf16, #tpu.memory_space<vmem>>, vector<512x256xbf16>
    %cst_30 = arith.constant dense<0.000000e+00> : vector<22x256xf32>
    %31 = tpu.matmul %29, %30, %cst_30 {dimension_numbers = #tpu.dot_dimension_numbers<[1], [0], [0], [1], [0, 0, 1, 1], [], []>} : vector<22x512xbf16>, vector<512x256xbf16>, vector<22x256xf32> -> vector<22x256xf32>
    %c0_31 = arith.constant 0 : index
    %c0_32 = arith.constant 0 : index
    %32 = vector.load %arg7[%c0_31, %c0_32] : memref<1x256xf32, #tpu.memory_space<vmem>>, vector<1x256xf32>
    %33 = vector.broadcast %32 : vector<1x256xf32> to vector<22x256xf32>
    %34 = arith.addf %31, %33 : vector<22x256xf32>
    %cst_33 = arith.constant 0.000000e+00 : f32
    %35 = vector.broadcast %cst_33 : f32 to vector<22x256xf32>
    %36 = arith.maximumf %34, %35 : vector<22x256xf32>
    %c0_34 = arith.constant 0 : index
    %c0_35 = arith.constant 0 : index
    %37 = vector.load %arg15[%c0_34, %c0_35] : memref<22x256xf32, #tpu.memory_space<vmem>>, vector<22x256xf32>
    tpu.vector_store %arg15[%c0_34, %c0_35], %36 {strides = array<i32>} : memref<22x256xf32, #tpu.memory_space<vmem>>, vector<22x256xf32>,
    %c0_36 = arith.constant 0 : index
    %c0_37 = arith.constant 0 : index
    %38 = vector.load %arg15[%c0_36, %c0_37] : memref<22x256xf32, #tpu.memory_space<vmem>>, vector<1x256xf32>
    %39 = arith.truncf %38 : vector<1x256xf32> to vector<1x256xbf16>
    %c0_38 = arith.constant 0 : index
    %c0_39 = arith.constant 0 : index
    %c0_40 = arith.constant 0 : index
    %40 = vector.load %arg8[%c0_38, %c0_39, %c0_40] : memref<6x256x128xbf16, #tpu.memory_space<vmem>>, vector<1x256x128xbf16>
    %41 = vector.shape_cast %40 : vector<1x256x128xbf16> to vector<256x128xbf16>
    %cst_41 = arith.constant dense<0.000000e+00> : vector<1x128xf32>
    %42 = tpu.matmul %39, %41, %cst_41 {dimension_numbers = #tpu.dot_dimension_numbers<[1], [0], [0], [1], [0, 0, 1, 1], [], []>} : vector<1x256xbf16>, vector<256x128xbf16>, vector<1x128xf32> -> vector<1x128xf32>
    %c4_42 = arith.constant 4 : index
    %c0_43 = arith.constant 0 : index
    %43 = vector.load %arg15[%c4_42, %c0_43] : memref<22x256xf32, #tpu.memory_space<vmem>>, vector<1x256xf32>
    %44 = arith.truncf %43 : vector<1x256xf32> to vector<1x256xbf16>
    %c1_44 = arith.constant 1 : index
    %c0_45 = arith.constant 0 : index
    %c0_46 = arith.constant 0 : index
    %45 = vector.load %arg8[%c1_44, %c0_45, %c0_46] : memref<6x256x128xbf16, #tpu.memory_space<vmem>>, vector<1x256x128xbf16>
    %46 = vector.shape_cast %45 : vector<1x256x128xbf16> to vector<256x128xbf16>
    %cst_47 = arith.constant dense<0.000000e+00> : vector<1x128xf32>
    %47 = tpu.matmul %44, %46, %cst_47 {dimension_numbers = #tpu.dot_dimension_numbers<[1], [0], [0], [1], [0, 0, 1, 1], [], []>} : vector<1x256xbf16>, vector<256x128xbf16>, vector<1x128xf32> -> vector<1x128xf32>
    %48 = arith.addf %42, %47 : vector<1x128xf32>
    %c8 = arith.constant 8 : index
    %c0_48 = arith.constant 0 : index
    %49 = vector.load %arg15[%c8, %c0_48] : memref<22x256xf32, #tpu.memory_space<vmem>>, vector<1x256xf32>
    %50 = arith.truncf %49 : vector<1x256xf32> to vector<1x256xbf16>
    %c2_49 = arith.constant 2 : index
    %c0_50 = arith.constant 0 : index
    %c0_51 = arith.constant 0 : index
    %51 = vector.load %arg8[%c2_49, %c0_50, %c0_51] : memref<6x256x128xbf16, #tpu.memory_space<vmem>>, vector<1x256x128xbf16>
    %52 = vector.shape_cast %51 : vector<1x256x128xbf16> to vector<256x128xbf16>
    %cst_52 = arith.constant dense<0.000000e+00> : vector<1x128xf32>
    %53 = tpu.matmul %50, %52, %cst_52 {dimension_numbers = #tpu.dot_dimension_numbers<[1], [0], [0], [1], [0, 0, 1, 1], [], []>} : vector<1x256xbf16>, vector<256x128xbf16>, vector<1x128xf32> -> vector<1x128xf32>
    %54 = arith.addf %48, %53 : vector<1x128xf32>
    %c12 = arith.constant 12 : index
    %c0_53 = arith.constant 0 : index
    %55 = vector.load %arg15[%c12, %c0_53] : memref<22x256xf32, #tpu.memory_space<vmem>>, vector<1x256xf32>
    %56 = arith.truncf %55 : vector<1x256xf32> to vector<1x256xbf16>
    %c3_54 = arith.constant 3 : index
    %c0_55 = arith.constant 0 : index
    %c0_56 = arith.constant 0 : index
    %57 = vector.load %arg8[%c3_54, %c0_55, %c0_56] : memref<6x256x128xbf16, #tpu.memory_space<vmem>>, vector<1x256x128xbf16>
    %58 = vector.shape_cast %57 : vector<1x256x128xbf16> to vector<256x128xbf16>
    %cst_57 = arith.constant dense<0.000000e+00> : vector<1x128xf32>
    %59 = tpu.matmul %56, %58, %cst_57 {dimension_numbers = #tpu.dot_dimension_numbers<[1], [0], [0], [1], [0, 0, 1, 1], [], []>} : vector<1x256xbf16>, vector<256x128xbf16>, vector<1x128xf32> -> vector<1x128xf32>
    %60 = arith.addf %54, %59 : vector<1x128xf32>
    %c16 = arith.constant 16 : index
    %c0_58 = arith.constant 0 : index
    %61 = vector.load %arg15[%c16, %c0_58] : memref<22x256xf32, #tpu.memory_space<vmem>>, vector<1x256xf32>
    %62 = arith.truncf %61 : vector<1x256xf32> to vector<1x256xbf16>
    %c4_59 = arith.constant 4 : index
    %c0_60 = arith.constant 0 : index
    %c0_61 = arith.constant 0 : index
    %63 = vector.load %arg8[%c4_59, %c0_60, %c0_61] : memref<6x256x128xbf16, #tpu.memory_space<vmem>>, vector<1x256x128xbf16>
    %64 = vector.shape_cast %63 : vector<1x256x128xbf16> to vector<256x128xbf16>
    %cst_62 = arith.constant dense<0.000000e+00> : vector<1x128xf32>
    %65 = tpu.matmul %62, %64, %cst_62 {dimension_numbers = #tpu.dot_dimension_numbers<[1], [0], [0], [1], [0, 0, 1, 1], [], []>} : vector<1x256xbf16>, vector<256x128xbf16>, vector<1x128xf32> -> vector<1x128xf32>
    %66 = arith.addf %60, %65 : vector<1x128xf32>
    %c20 = arith.constant 20 : index
    %c0_63 = arith.constant 0 : index
    %67 = vector.load %arg15[%c20, %c0_63] : memref<22x256xf32, #tpu.memory_space<vmem>>, vector<1x256xf32>
    %68 = arith.truncf %67 : vector<1x256xf32> to vector<1x256xbf16>
    %c5 = arith.constant 5 : index
    %c0_64 = arith.constant 0 : index
    %c0_65 = arith.constant 0 : index
    %69 = vector.load %arg8[%c5, %c0_64, %c0_65] : memref<6x256x128xbf16, #tpu.memory_space<vmem>>, vector<1x256x128xbf16>
    %70 = vector.shape_cast %69 : vector<1x256x128xbf16> to vector<256x128xbf16>
    %cst_66 = arith.constant dense<0.000000e+00> : vector<1x128xf32>
    %71 = tpu.matmul %68, %70, %cst_66 {dimension_numbers = #tpu.dot_dimension_numbers<[1], [0], [0], [1], [0, 0, 1, 1], [], []>} : vector<1x256xbf16>, vector<256x128xbf16>, vector<1x128xf32> -> vector<1x128xf32>
    %72 = arith.addf %66, %71 : vector<1x128xf32>
    %c0_67 = arith.constant 0 : index
    %c0_68 = arith.constant 0 : index
    %73 = vector.load %arg16[%c0_67, %c0_68] : memref<2x128xf32, #tpu.memory_space<vmem>>, vector<1x128xf32>
    tpu.vector_store %arg16[%c0_67, %c0_68], %72 {strides = array<i32>} : memref<2x128xf32, #tpu.memory_space<vmem>>, vector<1x128xf32>,
    %c1_69 = arith.constant 1 : index
    %c0_70 = arith.constant 0 : index
    %c0_71 = arith.constant 0 : index
    %74 = vector.load %arg1[%c1_69, %c0_70, %c0_71] : memref<2x31x4xf32, #tpu.memory_space<vmem>>, vector<1x31x4xf32>
    %75 = vector.shape_cast %74 : vector<1x31x4xf32> to vector<31x4xf32>
    %c0_72 = arith.constant 0 : index
    %c0_73 = arith.constant 0 : index
    %76 = vector.load %arg2[%c0_72, %c0_73] : memref<4x64xf32, #tpu.memory_space<vmem>>, vector<4x64xf32>
    %cst_74 = arith.constant dense<0.000000e+00> : vector<31x64xf32>
    %77 = tpu.matmul %75, %76, %cst_74 {dimension_numbers = #tpu.dot_dimension_numbers<[1], [0], [0], [1], [0, 0, 1, 1], [], []>} : vector<31x4xf32>, vector<4x64xf32>, vector<31x64xf32> -> vector<31x64xf32>
    %c0_75 = arith.constant 0 : index
    %c0_76 = arith.constant 0 : index
    %78 = vector.load %arg3[%c0_75, %c0_76] : memref<1x64xf32, #tpu.memory_space<vmem>>, vector<1x64xf32>
    %79 = vector.broadcast %78 : vector<1x64xf32> to vector<31x64xf32>
    %80 = arith.addf %77, %79 : vector<31x64xf32>
    %cst_77 = arith.constant 0.000000e+00 : f32
    %81 = vector.broadcast %cst_77 : f32 to vector<31x64xf32>
    %82 = arith.maximumf %80, %81 : vector<31x64xf32>
    %c0_78 = arith.constant 0 : index
    %c0_79 = arith.constant 0 : index
    %83 = vector.load %arg13[%c0_78, %c0_79] : memref<31x64xf32, #tpu.memory_space<vmem>>, vector<31x64xf32>
    tpu.vector_store %arg13[%c0_78, %c0_79], %82 {strides = array<i32>} : memref<31x64xf32, #tpu.memory_space<vmem>>, vector<31x64xf32>,
    %c0_80 = arith.constant 0 : index
    %c0_81 = arith.constant 0 : index
    %84 = vector.load %arg13[%c0_80, %c0_81] : memref<31x64xf32, #tpu.memory_space<vmem>>, vector<28x64xf32>
    %c1_82 = arith.constant 1 : index
    %c0_83 = arith.constant 0 : index
    %85 = vector.load %arg13[%c1_82, %c0_83] : memref<31x64xf32, #tpu.memory_space<vmem>>, vector<28x64xf32>
    %c2_84 = arith.constant 2 : index
    %c0_85 = arith.constant 0 : index
    %86 = vector.load %arg13[%c2_84, %c0_85] : memref<31x64xf32, #tpu.memory_space<vmem>>, vector<28x64xf32>
    %c3_86 = arith.constant 3 : index
    %c0_87 = arith.constant 0 : index
    %87 = vector.load %arg13[%c3_86, %c0_87] : memref<31x64xf32, #tpu.memory_space<vmem>>, vector<28x64xf32>
    %88 = tpu.concatenate %84, %85, %86, %87 in 1 : vector<28x64xf32>, vector<28x64xf32>, vector<28x64xf32>, vector<28x64xf32> -> vector<28x256xf32>
    %89 = arith.truncf %88 : vector<28x256xf32> to vector<28x256xbf16>
    %c0_88 = arith.constant 0 : index
    %c0_89 = arith.constant 0 : index
    %90 = vector.load %arg4[%c0_88, %c0_89] : memref<256x128xbf16, #tpu.memory_space<vmem>>, vector<256x128xbf16>
    %cst_90 = arith.constant dense<0.000000e+00> : vector<28x128xf32>
    %91 = tpu.matmul %89, %90, %cst_90 {dimension_numbers = #tpu.dot_dimension_numbers<[1], [0], [0], [1], [0, 0, 1, 1], [], []>} : vector<28x256xbf16>, vector<256x128xbf16>, vector<28x128xf32> -> vector<28x128xf32>
    %c0_91 = arith.constant 0 : index
    %c0_92 = arith.constant 0 : index
    %92 = vector.load %arg5[%c0_91, %c0_92] : memref<1x128xf32, #tpu.memory_space<vmem>>, vector<1x128xf32>
    %93 = vector.broadcast %92 : vector<1x128xf32> to vector<28x128xf32>
    %94 = arith.addf %91, %93 : vector<28x128xf32>
    %cst_93 = arith.constant 0.000000e+00 : f32
    %95 = vector.broadcast %cst_93 : f32 to vector<28x128xf32>
    %96 = arith.maximumf %94, %95 : vector<28x128xf32>
    %c0_94 = arith.constant 0 : index
    %c0_95 = arith.constant 0 : index
    %97 = vector.load %arg14[%c0_94, %c0_95] : memref<28x128xf32, #tpu.memory_space<vmem>>, vector<28x128xf32>
    tpu.vector_store %arg14[%c0_94, %c0_95], %96 {strides = array<i32>} : memref<28x128xf32, #tpu.memory_space<vmem>>, vector<28x128xf32>,
    %c0_96 = arith.constant 0 : index
    %c0_97 = arith.constant 0 : index
    %98 = vector.load %arg14[%c0_96, %c0_97] : memref<28x128xf32, #tpu.memory_space<vmem>>, vector<22x128xf32>
    %c2_98 = arith.constant 2 : index
    %c0_99 = arith.constant 0 : index
    %99 = vector.load %arg14[%c2_98, %c0_99] : memref<28x128xf32, #tpu.memory_space<vmem>>, vector<22x128xf32>
    %c4_100 = arith.constant 4 : index
    %c0_101 = arith.constant 0 : index
    %100 = vector.load %arg14[%c4_100, %c0_101] : memref<28x128xf32, #tpu.memory_space<vmem>>, vector<22x128xf32>
    %c6_102 = arith.constant 6 : index
    %c0_103 = arith.constant 0 : index
    %101 = vector.load %arg14[%c6_102, %c0_103] : memref<28x128xf32, #tpu.memory_space<vmem>>, vector<22x128xf32>
    %102 = tpu.concatenate %98, %99, %100, %101 in 1 : vector<22x128xf32>, vector<22x128xf32>, vector<22x128xf32>, vector<22x128xf32> -> vector<22x512xf32>
    %103 = arith.truncf %102 : vector<22x512xf32> to vector<22x512xbf16>
    %c0_104 = arith.constant 0 : index
    %c0_105 = arith.constant 0 : index
    %104 = vector.load %arg6[%c0_104, %c0_105] : memref<512x256xbf16, #tpu.memory_space<vmem>>, vector<512x256xbf16>
    %cst_106 = arith.constant dense<0.000000e+00> : vector<22x256xf32>
    %105 = tpu.matmul %103, %104, %cst_106 {dimension_numbers = #tpu.dot_dimension_numbers<[1], [0], [0], [1], [0, 0, 1, 1], [], []>} : vector<22x512xbf16>, vector<512x256xbf16>, vector<22x256xf32> -> vector<22x256xf32>
    %c0_107 = arith.constant 0 : index
    %c0_108 = arith.constant 0 : index
    %106 = vector.load %arg7[%c0_107, %c0_108] : memref<1x256xf32, #tpu.memory_space<vmem>>, vector<1x256xf32>
    %107 = vector.broadcast %106 : vector<1x256xf32> to vector<22x256xf32>
    %108 = arith.addf %105, %107 : vector<22x256xf32>
    %cst_109 = arith.constant 0.000000e+00 : f32
    %109 = vector.broadcast %cst_109 : f32 to vector<22x256xf32>
    %110 = arith.maximumf %108, %109 : vector<22x256xf32>
    %c0_110 = arith.constant 0 : index
    %c0_111 = arith.constant 0 : index
    %111 = vector.load %arg15[%c0_110, %c0_111] : memref<22x256xf32, #tpu.memory_space<vmem>>, vector<22x256xf32>
    tpu.vector_store %arg15[%c0_110, %c0_111], %110 {strides = array<i32>} : memref<22x256xf32, #tpu.memory_space<vmem>>, vector<22x256xf32>,
    %c0_112 = arith.constant 0 : index
    %c0_113 = arith.constant 0 : index
    %112 = vector.load %arg15[%c0_112, %c0_113] : memref<22x256xf32, #tpu.memory_space<vmem>>, vector<1x256xf32>
    %113 = arith.truncf %112 : vector<1x256xf32> to vector<1x256xbf16>
    %c0_114 = arith.constant 0 : index
    %c0_115 = arith.constant 0 : index
    %c0_116 = arith.constant 0 : index
    %114 = vector.load %arg8[%c0_114, %c0_115, %c0_116] : memref<6x256x128xbf16, #tpu.memory_space<vmem>>, vector<1x256x128xbf16>
    %115 = vector.shape_cast %114 : vector<1x256x128xbf16> to vector<256x128xbf16>
    %cst_117 = arith.constant dense<0.000000e+00> : vector<1x128xf32>
    %116 = tpu.matmul %113, %115, %cst_117 {dimension_numbers = #tpu.dot_dimension_numbers<[1], [0], [0], [1], [0, 0, 1, 1], [], []>} : vector<1x256xbf16>, vector<256x128xbf16>, vector<1x128xf32> -> vector<1x128xf32>
    %c4_118 = arith.constant 4 : index
    %c0_119 = arith.constant 0 : index
    %117 = vector.load %arg15[%c4_118, %c0_119] : memref<22x256xf32, #tpu.memory_space<vmem>>, vector<1x256xf32>
    %118 = arith.truncf %117 : vector<1x256xf32> to vector<1x256xbf16>
    %c1_120 = arith.constant 1 : index
    %c0_121 = arith.constant 0 : index
    %c0_122 = arith.constant 0 : index
    %119 = vector.load %arg8[%c1_120, %c0_121, %c0_122] : memref<6x256x128xbf16, #tpu.memory_space<vmem>>, vector<1x256x128xbf16>
    %120 = vector.shape_cast %119 : vector<1x256x128xbf16> to vector<256x128xbf16>
    %cst_123 = arith.constant dense<0.000000e+00> : vector<1x128xf32>
    %121 = tpu.matmul %118, %120, %cst_123 {dimension_numbers = #tpu.dot_dimension_numbers<[1], [0], [0], [1], [0, 0, 1, 1], [], []>} : vector<1x256xbf16>, vector<256x128xbf16>, vector<1x128xf32> -> vector<1x128xf32>
    %122 = arith.addf %116, %121 : vector<1x128xf32>
    %c8_124 = arith.constant 8 : index
    %c0_125 = arith.constant 0 : index
    %123 = vector.load %arg15[%c8_124, %c0_125] : memref<22x256xf32, #tpu.memory_space<vmem>>, vector<1x256xf32>
    %124 = arith.truncf %123 : vector<1x256xf32> to vector<1x256xbf16>
    %c2_126 = arith.constant 2 : index
    %c0_127 = arith.constant 0 : index
    %c0_128 = arith.constant 0 : index
    %125 = vector.load %arg8[%c2_126, %c0_127, %c0_128] : memref<6x256x128xbf16, #tpu.memory_space<vmem>>, vector<1x256x128xbf16>
    %126 = vector.shape_cast %125 : vector<1x256x128xbf16> to vector<256x128xbf16>
    %cst_129 = arith.constant dense<0.000000e+00> : vector<1x128xf32>
    %127 = tpu.matmul %124, %126, %cst_129 {dimension_numbers = #tpu.dot_dimension_numbers<[1], [0], [0], [1], [0, 0, 1, 1], [], []>} : vector<1x256xbf16>, vector<256x128xbf16>, vector<1x128xf32> -> vector<1x128xf32>
    %128 = arith.addf %122, %127 : vector<1x128xf32>
    %c12_130 = arith.constant 12 : index
    %c0_131 = arith.constant 0 : index
    %129 = vector.load %arg15[%c12_130, %c0_131] : memref<22x256xf32, #tpu.memory_space<vmem>>, vector<1x256xf32>
    %130 = arith.truncf %129 : vector<1x256xf32> to vector<1x256xbf16>
    %c3_132 = arith.constant 3 : index
    %c0_133 = arith.constant 0 : index
    %c0_134 = arith.constant 0 : index
    %131 = vector.load %arg8[%c3_132, %c0_133, %c0_134] : memref<6x256x128xbf16, #tpu.memory_space<vmem>>, vector<1x256x128xbf16>
    %132 = vector.shape_cast %131 : vector<1x256x128xbf16> to vector<256x128xbf16>
    %cst_135 = arith.constant dense<0.000000e+00> : vector<1x128xf32>
    %133 = tpu.matmul %130, %132, %cst_135 {dimension_numbers = #tpu.dot_dimension_numbers<[1], [0], [0], [1], [0, 0, 1, 1], [], []>} : vector<1x256xbf16>, vector<256x128xbf16>, vector<1x128xf32> -> vector<1x128xf32>
    %134 = arith.addf %128, %133 : vector<1x128xf32>
    %c16_136 = arith.constant 16 : index
    %c0_137 = arith.constant 0 : index
    %135 = vector.load %arg15[%c16_136, %c0_137] : memref<22x256xf32, #tpu.memory_space<vmem>>, vector<1x256xf32>
    %136 = arith.truncf %135 : vector<1x256xf32> to vector<1x256xbf16>
    %c4_138 = arith.constant 4 : index
    %c0_139 = arith.constant 0 : index
    %c0_140 = arith.constant 0 : index
    %137 = vector.load %arg8[%c4_138, %c0_139, %c0_140] : memref<6x256x128xbf16, #tpu.memory_space<vmem>>, vector<1x256x128xbf16>
    %138 = vector.shape_cast %137 : vector<1x256x128xbf16> to vector<256x128xbf16>
    %cst_141 = arith.constant dense<0.000000e+00> : vector<1x128xf32>
    %139 = tpu.matmul %136, %138, %cst_141 {dimension_numbers = #tpu.dot_dimension_numbers<[1], [0], [0], [1], [0, 0, 1, 1], [], []>} : vector<1x256xbf16>, vector<256x128xbf16>, vector<1x128xf32> -> vector<1x128xf32>
    %140 = arith.addf %134, %139 : vector<1x128xf32>
    %c20_142 = arith.constant 20 : index
    %c0_143 = arith.constant 0 : index
    %141 = vector.load %arg15[%c20_142, %c0_143] : memref<22x256xf32, #tpu.memory_space<vmem>>, vector<1x256xf32>
    %142 = arith.truncf %141 : vector<1x256xf32> to vector<1x256xbf16>
    %c5_144 = arith.constant 5 : index
    %c0_145 = arith.constant 0 : index
    %c0_146 = arith.constant 0 : index
    %143 = vector.load %arg8[%c5_144, %c0_145, %c0_146] : memref<6x256x128xbf16, #tpu.memory_space<vmem>>, vector<1x256x128xbf16>
    %144 = vector.shape_cast %143 : vector<1x256x128xbf16> to vector<256x128xbf16>
    %cst_147 = arith.constant dense<0.000000e+00> : vector<1x128xf32>
    %145 = tpu.matmul %142, %144, %cst_147 {dimension_numbers = #tpu.dot_dimension_numbers<[1], [0], [0], [1], [0, 0, 1, 1], [], []>} : vector<1x256xbf16>, vector<256x128xbf16>, vector<1x128xf32> -> vector<1x128xf32>
    %146 = arith.addf %140, %145 : vector<1x128xf32>
    %c1_148 = arith.constant 1 : index
    %c0_149 = arith.constant 0 : index
    %147 = vector.load %arg16[%c1_148, %c0_149] : memref<2x128xf32, #tpu.memory_space<vmem>>, vector<1x128xf32>
    tpu.vector_store %arg16[%c1_148, %c0_149], %146 {strides = array<i32>} : memref<2x128xf32, #tpu.memory_space<vmem>>, vector<1x128xf32>,
    %c0_150 = arith.constant 0 : index
    %c0_151 = arith.constant 0 : index
    %148 = vector.load %arg16[%c0_150, %c0_151] : memref<2x128xf32, #tpu.memory_space<vmem>>, vector<2x128xf32>
    %c0_152 = arith.constant 0 : index
    %c0_153 = arith.constant 0 : index
    %149 = vector.load %arg9[%c0_152, %c0_153] : memref<1x128xf32, #tpu.memory_space<vmem>>, vector<1x128xf32>
    %150 = vector.broadcast %149 : vector<1x128xf32> to vector<2x128xf32>
    %151 = arith.addf %148, %150 : vector<2x128xf32>
    %cst_154 = arith.constant 0.000000e+00 : f32
    %152 = vector.broadcast %cst_154 : f32 to vector<2x128xf32>
    %153 = arith.maximumf %151, %152 : vector<2x128xf32>
    %154 = arith.truncf %153 : vector<2x128xf32> to vector<2x128xbf16>
    %c0_155 = arith.constant 0 : index
    %c0_156 = arith.constant 0 : index
    %155 = vector.load %arg10[%c0_155, %c0_156] : memref<128x128xbf16, #tpu.memory_space<vmem>>, vector<128x128xbf16>
    %cst_157 = arith.constant dense<0.000000e+00> : vector<2x128xf32>
    %156 = tpu.matmul %154, %155, %cst_157 {dimension_numbers = #tpu.dot_dimension_numbers<[1], [0], [0], [1], [0, 0, 1, 1], [], []>} : vector<2x128xbf16>, vector<128x128xbf16>, vector<2x128xf32> -> vector<2x128xf32>
    %c0_158 = arith.constant 0 : index
    %c0_159 = arith.constant 0 : index
    %157 = vector.load %arg11[%c0_158, %c0_159] : memref<1x128xf32, #tpu.memory_space<vmem>>, vector<1x128xf32>
    %158 = vector.broadcast %157 : vector<1x128xf32> to vector<2x128xf32>
    %159 = arith.addf %156, %158 : vector<2x128xf32>
    %c0_160 = arith.constant 0 : index
    %c0_161 = arith.constant 0 : index
    %160 = vector.load %arg12[%c0_160, %c0_161] : memref<2x128xf32, #tpu.memory_space<vmem>>, vector<2x128xf32>
    tpu.vector_store %arg12[%c0_160, %c0_161], %159 {strides = array<i32>} : memref<2x128xf32, #tpu.memory_space<vmem>>, vector<2x128xf32>,
    return
  }
  func.func @transform_0(%arg0: i32) -> (i32, i32, i32) {
    %c0_i32 = arith.constant 0 : i32
    %c0_i32_0 = arith.constant 0 : i32
    %c0_i32_1 = arith.constant 0 : i32
    return %arg0, %c0_i32, %c0_i32_0 : i32, i32, i32
  }
  func.func @transform_1(%arg0: i32) -> (i32, i32) {
    %c0_i32 = arith.constant 0 : i32
    %c0_i32_0 = arith.constant 0 : i32
    %c0_i32_1 = arith.constant 0 : i32
    return %c0_i32, %c0_i32_0 : i32, i32
  }
  func.func @transform_2(%arg0: i32) -> (i32, i32) {
    %c0_i32 = arith.constant 0 : i32
    %c0_i32_0 = arith.constant 0 : i32
    %c0_i32_1 = arith.constant 0 : i32
    return %c0_i32, %c0_i32_0 : i32, i32
  }
  func.func @transform_3(%arg0: i32) -> (i32, i32) {
    %c0_i32 = arith.constant 0 : i32
    %c0_i32_0 = arith.constant 0 : i32
    %c0_i32_1 = arith.constant 0 : i32
    return %c0_i32, %c0_i32_0 : i32, i32
  }
  func.func @transform_4(%arg0: i32) -> (i32, i32) {
    %c0_i32 = arith.constant 0 : i32
    %c0_i32_0 = arith.constant 0 : i32
    %c0_i32_1 = arith.constant 0 : i32
    return %c0_i32, %c0_i32_0 : i32, i32
  }
  func.func @transform_5(%arg0: i32) -> (i32, i32) {
    %c0_i32 = arith.constant 0 : i32
    %c0_i32_0 = arith.constant 0 : i32
    %c0_i32_1 = arith.constant 0 : i32
    return %c0_i32, %c0_i32_0 : i32, i32
  }
  func.func @transform_6(%arg0: i32) -> (i32, i32) {
    %c0_i32 = arith.constant 0 : i32
    %c0_i32_0 = arith.constant 0 : i32
    %c0_i32_1 = arith.constant 0 : i32
    return %c0_i32, %c0_i32_0 : i32, i32
  }
  func.func @transform_7(%arg0: i32) -> (i32, i32, i32) {
    %c0_i32 = arith.constant 0 : i32
    %c0_i32_0 = arith.constant 0 : i32
    %c0_i32_1 = arith.constant 0 : i32
    %c0_i32_2 = arith.constant 0 : i32
    return %c0_i32, %c0_i32_0, %c0_i32_1 : i32, i32, i32
  }
  func.func @transform_8(%arg0: i32) -> (i32, i32) {
    %c0_i32 = arith.constant 0 : i32
    %c0_i32_0 = arith.constant 0 : i32
    %c0_i32_1 = arith.constant 0 : i32
    return %c0_i32, %c0_i32_0 : i32, i32
  }
  func.func @transform_9(%arg0: i32) -> (i32, i32) {
    %c0_i32 = arith.constant 0 : i32
    %c0_i32_0 = arith.constant 0 : i32
    %c0_i32_1 = arith.constant 0 : i32
    return %c0_i32, %c0_i32_0 : i32, i32
  }
  func.func @transform_10(%arg0: i32) -> (i32, i32) {
    %c0_i32 = arith.constant 0 : i32
    %c0_i32_0 = arith.constant 0 : i32
    %c0_i32_1 = arith.constant 0 : i32
    return %c0_i32, %c0_i32_0 : i32, i32
  }
  func.func @transform_11(%arg0: i32) -> (i32, i32) {
    %c0_i32 = arith.constant 0 : i32
    %c0_i32_0 = arith.constant 0 : i32
    return %arg0, %c0_i32 : i32, i32
  }
}

</mosaic_0001>

<bundles_post_ra>
// kernel: simple_conv1d_forward.1
= control target key start
LH: loop header
LB: loop body
LE: loop exit
PB: predicated region body
PF: predicated region fallthrough
CT: control target
= control target key end

     0   :  { %16 = vsyncpa [#allocation7], 0  ;;  %s6458_s0 = inlined_call_operand.vmem [shape: f32[2,31,4], index: 0, kind: input, shape index: {}]   ;;  %s6459_s1 = inlined_call_operand.vmem [shape: f32[4,64], index: 1, kind: input, shape index: {}]   ;;  %s6460_s2 = inlined_call_operand.vmem [shape: f32[1,64], index: 2, kind: input, shape index: {}]   ;;  %s6461_s3 = inlined_call_operand.vmem [shape: bf16[256,128], index: 3, kind: input, shape index: {}]   ;;  %s6462_s4 = inlined_call_operand.hbm [shape: f32[1,128], index: 4, kind: input, shape index: {}]   ;;  %s6463_s5 = inlined_call_operand.vmem [shape: bf16[512,256], index: 5, kind: input, shape index: {}]   ;;  %s6464_s6 = inlined_call_operand.hbm [shape: f32[1,256], index: 6, kind: input, shape index: {}]   ;;  %s6465_s7 = inlined_call_operand.hbm [shape: bf16[6,256,128], index: 7, kind: input, shape index: {}]   ;;  %s6466_s8 = inlined_call_operand.hbm [shape: f32[1,128], index: 8, kind: input, shape index: {}]   ;;  %s6467_s9 = inlined_call_operand.hbm [shape: bf16[128,128], index: 9, kind: input, shape index: {}]   ;;  %s6468_s10 = inlined_call_operand.hbm [shape: f32[1,128], index: 10, kind: input, shape index: {}]   ;;  %s6469_s11 = inlined_call_operand.hbm [shape: f32[2,128], index: 11, kind: output, shape index: {}]  }
   0x1   :  { %17 = vsyncpa [#allocation10], 0 }
   0x2   :  { %18 = vsyncpa [#allocation13], 0 }
   0x3   :  { %19 = vsyncpa [#allocation16], 0 }
   0x4   :  { %20 = vsyncpa [#allocation8], 0  ;;  %s5690_s17 = smov [#allocation9]   ;;  %s5691_s19 = smov [#allocation12]  }
   0x5   :  { %s47_s18 = sshll.u32 %s5690_s17, 4  ;;  %s69_s20 = sshll.u32 %s5691_s19, 4  ;;  %s48_s18 = int_to_ptr.vmem [resolvable:$true] %s47_s18  ;;  %s70_s20 = int_to_ptr.vmem [resolvable:$true] %s69_s20 }
   0x6   :  { %s5526_s23 = scalar_lea.hbm %s6464_s6, 32 }
   0x7   :  { %p5527_p0 = scmp.ne.s32.totalorder %s6464_s6, %s5526_s23  ;;  %p5530_p1 = scmp.lt.u32.totalorder %s5526_s23, %s6464_s6 }
   0x9   :  { %p5532_p2 = pnand %p5530_p1, %p5527_p0 }
   0xb   :  { %5535 = shalt.err (!%p5532_p2)
}
   0xc   :  { %s5536_s28 = scalar_lea.vmem %s48_s18, 32  ;;  %p5541_p4 = scmp.lt.s32.totalorder %s48_s18, %s48_s18 }
   0xd   :  { %p5537_p3 = scmp.ne.s32.totalorder %s48_s18, %s5536_s28  ;;  %p5542_p5 = scmp.lt.s32.totalorder %s5536_s28, %s5536_s28 }
   0xf   :  { %p5543_p6 = por %p5542_p5, %p5541_p4 }
  0x11   :  { %p5544_p7 = pnand %p5543_p6, %p5537_p3 }
  0x13   :  { %5547 = shalt.err (!%p5544_p7)
}
  0x14   :  { %50 = dma.hbm_to_vmem [thread:$0]  %s6464_s6, 32, %s48_s18, [#allocation10]  }
  0x15   :  { %s5548_s14 = scalar_lea.hbm %s6466_s8, 16 }
  0x16   :  { %p5549_p8 = scmp.ne.s32.totalorder %s6466_s8, %s5548_s14  ;;  %p5552_p9 = scmp.lt.u32.totalorder %s5548_s14, %s6466_s8 }
  0x18   :  { %p5554_p10 = pnand %p5552_p9, %p5549_p8 }
  0x1a   :  { %5557 = shalt.err (!%p5554_p10)
}
  0x1b   :  { %s5558_s21 = scalar_lea.vmem %s70_s20, 16  ;;  %s5562_s22 = scalar_lea.vmem %s70_s20, 32 }
  0x1c   :  { %p5559_p11 = scmp.ne.s32.totalorder %s70_s20, %s5558_s21  ;;  %p5563_p12 = scmp.lt.s32.totalorder %s70_s20, %s70_s20 }
  0x1d   :  { %p5564_p13 = scmp.lt.s32.totalorder %s5562_s22, %s5558_s21 }
  0x1f   :  { %p5565_p0 = por %p5564_p13, %p5563_p12 }
  0x21   :  { %p5566_p1 = pnand %p5565_p0, %p5559_p11 }
  0x23   :  { %5569 = shalt.err (!%p5566_p1)
}
  0x24   :  { %72 = dma.hbm_to_vmem [thread:$0]  %s6466_s8, 16, %s70_s20, [#allocation13]  }
  0x25   :  { %s5692_s23 = smov [#allocation6]   ;;  %s5693_s25 = smov [#allocation11]  }
  0x26   :  { %s35_s24 = sshll.u32 %s5692_s23, 4  ;;  %s56_s26 = sshll.u32 %s5693_s25, 4  ;;  %s36_s24 = int_to_ptr.vmem [resolvable:$true] %s35_s24  ;;  %s5785_s26 = int_to_ptr.vmem [resolvable:$true] %s56_s26 }
  0x27   :  { %s5570_s29 = scalar_lea.hbm %s6462_s4, 16 }
  0x28   :  { %p5571_p2 = scmp.ne.s32.totalorder %s6462_s4, %s5570_s29  ;;  %p5574_p3 = scmp.lt.u32.totalorder %s5570_s29, %s6462_s4 }
  0x2a   :  { %p5576_p4 = pnand %p5574_p3, %p5571_p2 }
  0x2c   :  { %5579 = shalt.err (!%p5576_p4)
}
  0x2d   :  { %s5580_s8 = scalar_lea.vmem %s36_s24, 16  ;;  %s5584_s20 = scalar_lea.vmem %s36_s24, 32 }
  0x2e   :  { %p5581_p5 = scmp.ne.s32.totalorder %s36_s24, %s5580_s8  ;;  %p5585_p6 = scmp.lt.s32.totalorder %s36_s24, %s36_s24 }
  0x2f   :  { %p5586_p7 = scmp.lt.s32.totalorder %s5584_s20, %s5580_s8 }
  0x31   :  { %p5587_p8 = por %p5586_p7, %p5585_p6 }
  0x33   :  { %p5588_p9 = pnand %p5587_p8, %p5581_p5 }
  0x35   :  { %5591 = shalt.err (!%p5588_p9)
}
  0x36   :  { %38 = dma.hbm_to_vmem [thread:$0]  %s6462_s4, 16, %s36_s24, [#allocation7]  }
  0x37   :  { %s5592_s21 = scalar_lea.hbm %s6465_s7, 12288 }
  0x38   :  { %p5593_p10 = scmp.ne.s32.totalorder %s6465_s7, %s5592_s21  ;;  %p5596_p11 = scmp.lt.u32.totalorder %s5592_s21, %s6465_s7 }
  0x3a   :  { %p5598_p12 = pnand %p5596_p11, %p5593_p10 }
  0x3c   :  { %5601 = shalt.err (!%p5598_p12)
}
  0x3d   :  { %s5602_s25 = scalar_lea.vmem %s5785_s26, 12288  ;;  %p5607_p0 = scmp.lt.s32.totalorder %s5785_s26, %s5785_s26 }
  0x3e   :  { %p5603_p13 = scmp.ne.s32.totalorder %s5785_s26, %s5602_s25  ;;  %p5608_p1 = scmp.lt.s32.totalorder %s5602_s25, %s5602_s25 }
  0x40   :  { %p5609_p2 = por %p5608_p1, %p5607_p0 }
  0x42   :  { %p5610_p3 = pnand %p5609_p2, %p5603_p13 }
  0x44   :  { %5613 = shalt.err (!%p5610_p3)
}
  0x45   :  { %s5694_s4 = smov 64   ;;  %s5695_s24 = smov 4  }
  0x46   :  { %62 = dma.hbm_to_vmem [thread:$0]  %s6465_s7, 12288, %s5785_s26, [#allocation10], %s5694_s4, %s5694_s4, %s5695_s24  }
  0x47   :  { %s5696_s29 = smov [#allocation14]   ;;  %s5697_s12 = smov [#allocation15]  }
  0x48   :  { %s78_s30 = sshll.u32 %s5696_s29, 4  ;;  %s91_s13 = sshll.u32 %s5697_s12, 4  ;;  %s79_s30 = int_to_ptr.vmem [resolvable:$true] %s78_s30  ;;  %s92_s13 = int_to_ptr.vmem [resolvable:$true] %s91_s13 }
  0x49   :  { %s5614_s20 = scalar_lea.hbm %s6467_s9, 1024 }
  0x4a   :  { %p5615_p4 = scmp.ne.s32.totalorder %s6467_s9, %s5614_s20  ;;  %p5618_p5 = scmp.lt.u32.totalorder %s5614_s20, %s6467_s9 }
  0x4c   :  { %p5620_p6 = pnand %p5618_p5, %p5615_p4 }
  0x4e   :  { %5623 = shalt.err (!%p5620_p6)
}
  0x4f   :  { %s5624_s7 = scalar_lea.vmem %s79_s30, 1024  ;;  %p5629_p8 = scmp.lt.s32.totalorder %s79_s30, %s79_s30 }
  0x50   :  { %p5625_p7 = scmp.ne.s32.totalorder %s79_s30, %s5624_s7  ;;  %p5630_p9 = scmp.lt.s32.totalorder %s5624_s7, %s5624_s7 }
  0x52   :  { %p5631_p10 = por %p5630_p9, %p5629_p8 }
  0x54   :  { %p5632_p11 = pnand %p5631_p10, %p5625_p7 }
  0x56   :  { %5635 = shalt.err (!%p5632_p11)
}
  0x57   :  { %84 = dma.hbm_to_vmem [thread:$0]  %s6467_s9, 1024, %s79_s30, [#allocation13], %s5694_s4, %s5694_s4, %s5695_s24  }
  0x58   :  { %s5636_s18 = scalar_lea.hbm %s6468_s10, 16 }
  0x59   :  { %p5637_p12 = scmp.ne.s32.totalorder %s6468_s10, %s5636_s18  ;;  %p5640_p13 = scmp.lt.u32.totalorder %s5636_s18, %s6468_s10 }
  0x5b   :  { %p5642_p0 = pnand %p5640_p13, %p5637_p12 }
  0x5d   :  { %5645 = shalt.err (!%p5642_p0)
}
  0x5e   :  { %s5646_s29 = scalar_lea.vmem %s92_s13, 16  ;;  %s5650_s12 = scalar_lea.vmem %s92_s13, 32 }
  0x5f   :  { %p5647_p1 = scmp.ne.s32.totalorder %s92_s13, %s5646_s29  ;;  %p5651_p2 = scmp.lt.s32.totalorder %s92_s13, %s92_s13 }
  0x60   :  { %p5652_p3 = scmp.lt.s32.totalorder %s5650_s12, %s5646_s29 }
  0x62   :  { %p5653_p4 = por %p5652_p3, %p5651_p2 }
  0x64   :  { %p5654_p5 = pnand %p5653_p4, %p5647_p1 }
  0x66   :  { %5657 = shalt.err (!%p5654_p5)
}
  0x67   :  { %94 = dma.hbm_to_vmem [thread:$0]  %s6468_s10, 16, %s92_s13, [#allocation16]  }
  0x68   :  { %5680 = dma.done.wait [#allocation7], 16  }
  0x69   :  { %5681 = vsyncadd [#allocation7], 4294967280 }
  0x6a   :  { %5682 = dma.done.wait [#allocation10], 12320  }
  0x6b   :  { %5683 = vsyncadd [#allocation10], 4294954976 }
  0x6c   :  { %5684 = dma.done.wait [#allocation13], 1040  }
  0x6d   :  { %5685 = vsyncadd [#allocation13], 4294966256 }
  0x6e   :  { %5686 = dma.done.wait [#allocation16], 16  }
  0x6f   :  { %5687 = vsyncadd [#allocation16], 4294967280  ;;  %vm139_vm0 = vcmask 1043456   ;;  %vm126_vm1 = vcmask 31744   ;;  %v118_v0 = vld [vmem:[%s6459_s1] sm:$0xf] }
  0x70   :  { %v114_v1 = vld [vmem:[%s6458_s0] sm:$0xff]  ;;  %v115_v2 = vld [vmem:[%s6458_s0 + $0x8] sm:$0xff]  ;;  %4987 = vmatprep.subr.msk.mxu0 %vm139_vm0, %v118_v0  ;;  %v116_v3 = vld [vmem:[%s6458_s0 + $0x10] sm:$0xff]  ;;  %vm232_vm2 = vcmask 523264   ;;  %vm236_vm3 = vcmask 522240   ;;  %vm5699_vm4 = vmmov 0  }
  0x71   :  { %4989 = vmatprep.mubr.msk.f32.mxu0 %vm126_vm1, %v114_v1  ;;  %4988 = vmatpush3.msk.msra.mxu0 %vm139_vm0, %v118_v0  ;;  %v117_v4 = vld [vmem:[%s6458_s0 + $0x18] sm:$0x7f]  ;;  %v5102_v5 = vld [vmem:[%s6461_s3 + $0x40] sm:$0xff]   ;;  %v5104_v7 = vld [vmem:[%s6461_s3 + $0x48] sm:$0xff]  }
  0x72   :  { %4990 = vmatmul.mubr.msk.f32.vlgmr.msra.gmra.mrb[0].mxu0 %vm126_vm1, %v115_v2  ;;  %v5103_v6 = vld [vmem:[%s6461_s3] sm:$0xff]   ;;  %4653 = vmatprep.subr.bf16.mxu1 %v5102_v5  ;;  %v5105_v8 = vld [vmem:[%s6461_s3 + $0x8] sm:$0xff]   ;;  %v5106_v9 = vld [vmem:[%s6461_s3 + $0x50] sm:$0xff]  }
  0x73   :  { %4992 = vmatprep.mubr.msk.f32.mxu0 %vm126_vm1, %v116_v3  ;;  %4654 = vmatpush3.bf16.msra.mxu1 %v5103_v6  ;;  %v5107_v10 = vld [vmem:[%s6461_s3 + $0x10] sm:$0xff]   ;;  %v5108_v11 = vld [vmem:[%s6461_s3 + $0x58] sm:$0xff]   ;;  %v5110_v13 = vld [vmem:[%s6461_s3 + $0x60] sm:$0xff]  }
  0x74   :  { %4655 = vmatprep.subr.bf16.mxu1 %v5104_v7  ;;  %v5109_v12 = vld [vmem:[%s6461_s3 + $0x18] sm:$0xff]   ;;  %v5111_v14 = vld [vmem:[%s6461_s3 + $0x20] sm:$0xff]   ;;  %v5112_v15 = vld [vmem:[%s6461_s3 + $0x68] sm:$0xff]  }
  0x75   :  { %v5113_v16 = vld [vmem:[%s6461_s3 + $0x28] sm:$0xff]   ;;  %v4268_v17 = vld [vmem:[%s6460_s2] ss:$0 sm:$0xff]  ;;  %v5114_v29 = vld [vmem:[%s6461_s3 + $0x70] sm:$0xff]  }
  0x76   :  { %4993 = vmatmul.mubr.msk.f32.gmra.mrb[2].mxu0 %vm126_vm1, %v117_v4  ;;  %v5115_v30 = vld [vmem:[%s6461_s3 + $0x30] sm:$0xff]   ;;  %v5116_v32 = vld [vmem:[%s6461_s3 + $0x78] sm:$0xff]   ;;  %v5118_v46 = vld [vmem:[%s6463_s5] ss:$8 sps:$4 sm:$0xff]  }
  0x77   :  { %4656 = vmatpush3.bf16.msra.mxu1 %v5105_v8  ;;  %v5117_v33 = vld [vmem:[%s6461_s3 + $0x38] sm:$0xff]   ;;  %v5120_v47 = vld [vmem:[%s6463_s5 + $0x4] ss:$8 sps:$4 sm:$0xff]   ;;  %v5124_v51 = vld [vmem:[%s6463_s5 + $0x20] ss:$8 sps:$4 sm:$0xff]  }
  0x78   :  { %4657 = vmatprep.subr.bf16.mxu1 %v5106_v9  ;;  %v5123_v48 = vld [vmem:[%s6463_s5 + $0x14] ss:$8 sps:$4 sm:$0xff]   ;;  %906 = vmatprep.subr.bf16.mxu0 %v5120_v47  ;;  %v5121_v49 = vld [vmem:[%s6463_s5 + $0x10] ss:$8 sps:$4 sm:$0xff]   ;;  %v5126_v50 = vld [vmem:[%s6463_s5 + $0x24] ss:$8 sps:$4 sm:$0xff]  }
  0x79   :  { %907 = vmatpush1.bf16.msra.mxu0 %v5118_v46  ;;  %v5129_v52 = vld [vmem:[%s6463_s5 + $0x34] ss:$8 sps:$4 sm:$0xff]   ;;  %v5127_v53 = vld [vmem:[%s6463_s5 + $0x30] ss:$8 sps:$4 sm:$0xff]   ;;  %v5132_v54 = vld [vmem:[%s6463_s5 + $0x44] ss:$8 sps:$4 sm:$0xff]  }
  0x7a   :  { %908 = vmatprep.subr.bf16.mxu0 %v5123_v48  ;;  %v5130_v55 = vld [vmem:[%s6463_s5 + $0x40] ss:$8 sps:$4 sm:$0xff]   ;;  %v5135_v56 = vld [vmem:[%s6463_s5 + $0x54] ss:$8 sps:$4 sm:$0xff]   ;;  %v5133_v57 = vld [vmem:[%s6463_s5 + $0x50] ss:$8 sps:$4 sm:$0xff]  }
  0x7b   :  { %4658 = vmatpush3.bf16.msra.mxu1 %v5107_v10  ;;  %v5138_v58 = vld [vmem:[%s6463_s5 + $0x64] ss:$8 sps:$4 sm:$0xff]   ;;  %v5136_v59 = vld [vmem:[%s6463_s5 + $0x60] ss:$8 sps:$4 sm:$0xff]   ;;  %v5141_v60 = vld [vmem:[%s6463_s5 + $0x74] ss:$8 sps:$4 sm:$0xff]  }
  0x7c   :  { %4659 = vmatprep.subr.bf16.mxu1 %v5108_v11  ;;  %v5139_v61 = vld [vmem:[%s6463_s5 + $0x70] ss:$8 sps:$4 sm:$0xff]   ;;  %v5144_v62 = vld [vmem:[%s6463_s5 + $0x84] ss:$8 sps:$4 sm:$0xff]   ;;  %v5142_v63 = vld [vmem:[%s6463_s5 + $0x80] ss:$8 sps:$4 sm:$0xff]  }
  0x7d   :  { %909 = vmatpush1.bf16.msra.mxu0 %v5121_v49  ;;  %v5147_v0 = vld [vmem:[%s6463_s5 + $0x94] ss:$8 sps:$4 sm:$0xff]   ;;  %v5145_v1 = vld [vmem:[%s6463_s5 + $0x90] ss:$8 sps:$4 sm:$0xff]   ;;  %v5168_v46 = vld [vmem:[%s6463_s5 + $0x104] ss:$8 sps:$4 sm:$0xff]  }
  0x7e   :  { %910 = vmatprep.subr.bf16.mxu0 %v5126_v50  ;;  %v5214_v47 = vld [vmem:[#allocation11 + $0xc0] sm:$0xff]   ;;  %v5216_v49 = vld [vmem:[#allocation11 + $0xc8] sm:$0xff]  }
  0x7f   :  { %4660 = vmatpush3.bf16.msra.mxu1 %v5109_v12  ;;  %v5215_v48 = vld [vmem:[#allocation11 + $0x80] sm:$0xff]   ;;  %v5217_v50 = vld [vmem:[#allocation11 + $0x88] sm:$0xff]  }
  0x80   :  { %4661 = vmatprep.subr.bf16.mxu1 %v5110_v13 }
  0x81   :  { %911 = vmatpush1.bf16.msra.mxu0 %v5124_v51  ;;  %v5218_v51 = vld [vmem:[#allocation11 + $0xd0] sm:$0xff]  }
  0x82   :  { %912 = vmatprep.subr.bf16.mxu0 %v5129_v52  ;;  %v5220_v52 = vld [vmem:[#allocation11 + $0x90] sm:$0xff]  }
  0x83   :  { %4662 = vmatpush3.bf16.msra.mxu1 %v5111_v14 }
  0x84   :  { %4663 = vmatprep.subr.bf16.mxu1 %v5112_v15 }
  0x85   :  { %913 = vmatpush1.bf16.msra.mxu0 %v5127_v53  ;;  %v5222_v53 = vld [vmem:[#allocation11 + $0xd8] sm:$0xff]  }
  0x86   :  { %914 = vmatprep.subr.bf16.mxu0 %v5132_v54  ;;  %v5224_v54 = vld [vmem:[#allocation11 + $0x98] sm:$0xff]  }
  0x87   :  { %4664 = vmatpush3.bf16.msra.mxu1 %v5113_v16 }
  0x88   :  { %4665 = vmatprep.subr.bf16.mxu1 %v5114_v29 }
  0x89   :  { %915 = vmatpush1.bf16.msra.mxu0 %v5130_v55 }
  0x8a   :  { %916 = vmatprep.subr.bf16.mxu0 %v5135_v56  ;;  %v4274_v56 = vld [vmem:[#allocation6] ss:$0 sm:$0xff] }
  0x8b   :  { %4666 = vmatpush3.bf16.msra.mxu1 %v5115_v30 }
  0x8c   :  { %4667 = vmatprep.subr.bf16.mxu1 %v5116_v32 }
  0x8d   :  { %917 = vmatpush1.bf16.msra.mxu0 %v5133_v57 }
  0x8e   :  { %918 = vmatprep.subr.bf16.mxu0 %v5138_v58 }
  0x8f   :  { %4668 = vmatpush3.bf16.msra.mxu1 %v5117_v33 }
  0x90   :  { %4681 = vmatprep.subr.bf16.mxu1 %v5214_v47  ;;  %v5202_v47 = vld [vmem:[%s6463_s5 + $0x1c0] ss:$8 sps:$4 sm:$0xff]  }
  0x91   :  { %919 = vmatpush1.bf16.msra.mxu0 %v5136_v59 }
  0x92   :  { %920 = vmatprep.subr.bf16.mxu0 %v5141_v60 }
  0x95   :  { %921 = vmatpush1.bf16.msra.mxu0 %v5139_v61 }
  0x96   :  { %922 = vmatprep.subr.bf16.mxu0 %v5144_v62 }
  0x99   :  { %923 = vmatpush1.bf16.msra.mxu0 %v5142_v63 }
  0x9a   :  { %924 = vmatprep.subr.bf16.mxu0 %v5147_v0 }
  0x9d   :  { %925 = vmatpush1.bf16.msra.mxu0 %v5145_v1 }
 0x145   :  { %v4991_v18 = vpop.f32.mrb[0].mxu0 }
 0x146   :  { %v215_v19 = vadd.f32 %v4991_v18, %v4268_v17  ;;  %v209_v20 = vpop.f32.mrb[1].mxu0 }
 0x147   :  { %v210_v21 = vadd.f32 %v4268_v17, %v209_v20 }
 0x148   :  { %v229_v22 = vmax.f32 %v215_v19, 0.0 }
 0x149   :  { %v228_v23 = vmax.f32 %v210_v21, 0.0  ;;  %v4994_v24 = vpop.f32.mrb[2].mxu0 }
 0x14a   :  { %234 = vst.msk [vmem:[#allocation2 + $0x8] sm:$0xff] %vm232_vm2, %v229_v22  ;;  %v225_v25 = vadd.f32 %v4994_v24, %v4268_v17  ;;  %v219_v26 = vpop.f32.mrb[3].mxu0 }
 0x14b   :  { %233 = vst.msk [vmem:[#allocation2] sm:$0xff] %vm232_vm2, %v228_v23  ;;  %v220_v27 = vadd.f32 %v4268_v17, %v219_v26 }
 0x14c   :  { %v231_v28 = vmax.f32 %v225_v25, 0.0 }
 0x14d   :  { %v230_v31 = vmax.f32 %v220_v27, 0.0 }
 0x14e   :  { %237 = vst.msk [vmem:[#allocation2 + $0x18] sm:$0x7f] %vm236_vm3, %v231_v28 }
 0x14f   :  { %235 = vst.msk [vmem:[#allocation2 + $0x10] sm:$0xff] %vm232_vm2, %v230_v31 }
 0x151   :  { %v239_v20 = vld [vmem:[#allocation2 + $0x8] sm:$0xff] }
 0x152   :  { %v250_v36 = vld [vmem:[#allocation2 + $0x3] sm:$0xff] }
 0x153   :  { %v242_v43 = vld [vmem:[#allocation2 + $0x1] sm:$0xff] }
 0x154   :  { %v246_v8 = vld [vmem:[#allocation2 + $0x2] sm:$0xff] }
 0x155   :  { %v253_v34 = vld [vmem:[#allocation2 + $0x1b] sm:$0xf]  ;;  %v238_v19 = vld [vmem:[#allocation2] sm:$0xff] }
 0x156   :  { %v252_v35 = vld [vmem:[#allocation2 + $0x13] sm:$0xff]  ;;  %v251_v37 = vld [vmem:[#allocation2 + $0xb] sm:$0xff] }
 0x157   :  { %v5072_v38 = vpack.i.bf16 %v253_v34, %v252_v35  ;;  %v5062_v39 = vpack.i.bf16 %v251_v37, %v250_v36  ;;  %v244_v40 = vld [vmem:[#allocation2 + $0x11] sm:$0xff]  ;;  %v245_v41 = vld [vmem:[#allocation2 + $0x19] sm:$0xf]  ;;  %v243_v42 = vld [vmem:[#allocation2 + $0x9] sm:$0xff] }
 0x158   :  { %v5077_v44 = vpack.i.bf16 %v245_v41, %v244_v40  ;;  %v5067_v45 = vpack.i.bf16 %v243_v42, %v242_v43  ;;  %v247_v9 = vld [vmem:[#allocation2 + $0xa] sm:$0xff]  ;;  %v248_v16 = vld [vmem:[#allocation2 + $0x12] sm:$0xff]  ;;  %v249_v17 = vld [vmem:[#allocation2 + $0x1a] sm:$0xf] }
 0x159   :  { %5073 = vrot.lane.b32.xlu1 %v5072_v38, %s5694_s4  ;;  %5063 = vrot.lane.b32.xlu0 %v5062_v39, %s5694_s4  ;;  %v240_v29 = vld [vmem:[#allocation2 + $0x10] sm:$0xff]  ;;  %v241_v30 = vld [vmem:[#allocation2 + $0x18] sm:$0xf]  ;;  %v5150_v34 = vld [vmem:[%s6463_s5 + $0xa4] ss:$8 sps:$4 sm:$0xff]  }
 0x15a   :  { %v5148_v35 = vld [vmem:[%s6463_s5 + $0xa0] ss:$8 sps:$4 sm:$0xff]   ;;  %926 = vmatprep.subr.bf16.mxu0 %v5150_v34  ;;  %v5153_v36 = vld [vmem:[%s6463_s5 + $0xb4] ss:$8 sps:$4 sm:$0xff]   ;;  %v5151_v37 = vld [vmem:[%s6463_s5 + $0xb0] ss:$8 sps:$4 sm:$0xff]  }
 0x15b   :  { %927 = vmatpush1.bf16.msra.mxu0 %v5148_v35  ;;  %v5156_v38 = vld [vmem:[%s6463_s5 + $0xc4] ss:$8 sps:$4 sm:$0xff]   ;;  %v5154_v39 = vld [vmem:[%s6463_s5 + $0xc0] ss:$8 sps:$4 sm:$0xff]   ;;  %v5159_v40 = vld [vmem:[%s6463_s5 + $0xd4] ss:$8 sps:$4 sm:$0xff]  }
 0x15c   :  { %928 = vmatprep.subr.bf16.mxu0 %v5153_v36  ;;  %v5157_v41 = vld [vmem:[%s6463_s5 + $0xd0] ss:$8 sps:$4 sm:$0xff]   ;;  %v5160_v42 = vld [vmem:[%s6463_s5 + $0xe0] ss:$8 sps:$4 sm:$0xff]   ;;  %v5162_v43 = vld [vmem:[%s6463_s5 + $0xe4] ss:$8 sps:$4 sm:$0xff]  }
 0x15d   :  { %5078 = vrot.lane.b32.xlu1 %v5077_v44, %s5694_s4  ;;  %5068 = vrot.lane.b32.xlu0 %v5067_v45, %s5694_s4  ;;  %v5165_v44 = vld [vmem:[%s6463_s5 + $0xf4] ss:$8 sps:$4 sm:$0xff]   ;;  %v5163_v45 = vld [vmem:[%s6463_s5 + $0xf0] ss:$8 sps:$4 sm:$0xff]  }
 0x15e   :  { %v5186_v34 = vld [vmem:[%s6463_s5 + $0x164] ss:$8 sps:$4 sm:$0xff]   ;;  %v5184_v35 = vld [vmem:[%s6463_s5 + $0x160] ss:$8 sps:$4 sm:$0xff]   ;;  %v5189_v36 = vld [vmem:[%s6463_s5 + $0x174] ss:$8 sps:$4 sm:$0xff]  }
 0x15f   :  { %929 = vmatpush1.bf16.msra.mxu0 %v5151_v37  ;;  %v5187_v37 = vld [vmem:[%s6463_s5 + $0x170] ss:$8 sps:$4 sm:$0xff]  }
 0x160   :  { %930 = vmatprep.subr.bf16.mxu0 %v5156_v38  ;;  %v5192_v38 = vld [vmem:[%s6463_s5 + $0x184] ss:$8 sps:$4 sm:$0xff]  }
 0x163   :  { %931 = vmatpush1.bf16.msra.mxu0 %v5154_v39  ;;  %v5190_v39 = vld [vmem:[%s6463_s5 + $0x180] ss:$8 sps:$4 sm:$0xff]  }
 0x164   :  { %932 = vmatprep.subr.bf16.mxu0 %v5159_v40  ;;  %v5195_v40 = vld [vmem:[%s6463_s5 + $0x194] ss:$8 sps:$4 sm:$0xff]  }
 0x167   :  { %933 = vmatpush1.bf16.msra.mxu0 %v5157_v41  ;;  %v5193_v41 = vld [vmem:[%s6463_s5 + $0x190] ss:$8 sps:$4 sm:$0xff]  }
 0x168   :  { %934 = vmatprep.subr.bf16.mxu0 %v5162_v43  ;;  %v5196_v43 = vld [vmem:[%s6463_s5 + $0x1a0] ss:$8 sps:$4 sm:$0xff]  }
 0x16b   :  { %935 = vmatpush1.bf16.msra.mxu0 %v5160_v42  ;;  %v5198_v42 = vld [vmem:[%s6463_s5 + $0x1a4] ss:$8 sps:$4 sm:$0xff]  }
 0x16c   :  { %936 = vmatprep.subr.bf16.mxu0 %v5165_v44  ;;  %v5201_v44 = vld [vmem:[%s6463_s5 + $0x1b4] ss:$8 sps:$4 sm:$0xff]  }
 0x16f   :  { %937 = vmatpush1.bf16.msra.mxu0 %v5163_v45  ;;  %v5199_v45 = vld [vmem:[%s6463_s5 + $0x1b0] ss:$8 sps:$4 sm:$0xff]  }
 0x170   :  { %957 = vmatprep.subr.bf16.mxu0 %v5168_v46  ;;  %v5204_v46 = vld [vmem:[%s6463_s5 + $0x1c4] ss:$8 sps:$4 sm:$0xff]  }
 0x1cb   :  { %v5074_v2 = vpop.permute.xlu1 %5073  ;;  %v5064_v3 = vpop.permute.xlu0 %5063 }
 0x1cc   :  { %v5066_v4 = vunpack.i.h.bf16 %v5064_v3  ;;  %v5065_v5 = vunpack.i.l.bf16 %v5064_v3  ;;  %v5076_v6 = vunpack.i.h.bf16 %v5074_v2  ;;  %v5075_v7 = vunpack.i.l.bf16 %v5074_v2 }
 0x1ce   :  { %v290_v10 = vsel %vm232_vm2, %v246_v8, %v5065_v5  ;;  %v291_v11 = vsel %vm232_vm2, %v247_v9, %v5066_v4  ;;  %v292_v21 = vsel %vm232_vm2, %v248_v16, %v5075_v7  ;;  %v293_v22 = vsel %vm232_vm2, %v249_v17, %v5076_v6  ;;  %v5166_v17 = vld [vmem:[%s6463_s5 + $0x100] ss:$8 sps:$4 sm:$0xff]  }
 0x1cf   :  { %v5069_v12 = vpop.permute.xlu0 %5068  ;;  %v295_v13 = vpack.c.bf16 %v291_v11, %v290_v10  ;;  %v5079_v18 = vpop.permute.xlu1 %5078  ;;  %v297_v28 = vpack.c.bf16 %v293_v22, %v292_v21  ;;  %v5174_v21 = vld [vmem:[%s6463_s5 + $0x124] ss:$8 sps:$4 sm:$0xff]  }
 0x1d0   :  { %v5071_v14 = vunpack.i.h.bf16 %v5069_v12  ;;  %v5070_v15 = vunpack.i.l.bf16 %v5069_v12  ;;  %v5081_v26 = vunpack.i.h.bf16 %v5079_v18  ;;  %v5080_v27 = vunpack.i.l.bf16 %v5079_v18  ;;  %v5171_v18 = vld [vmem:[%s6463_s5 + $0x114] ss:$8 sps:$4 sm:$0xff]  }
 0x1d1   :  { %465 = vmatprep.mubr.bf16.mxu1 %v295_v13 }
 0x1d2   :  { %v286_v23 = vsel %vm232_vm2, %v238_v19, %v5070_v15  ;;  %v287_v24 = vsel %vm232_vm2, %v239_v20, %v5071_v14  ;;  %v288_v31 = vsel %vm232_vm2, %v240_v29, %v5080_v27  ;;  %v289_v32 = vsel %vm232_vm2, %v241_v30, %v5081_v26  ;;  %v5169_v20 = vld [vmem:[%s6463_s5 + $0x110] ss:$8 sps:$4 sm:$0xff]   ;;  %v5177_v27 = vld [vmem:[%s6463_s5 + $0x134] ss:$8 sps:$4 sm:$0xff]   ;;  %v5180_v30 = vld [vmem:[%s6463_s5 + $0x144] ss:$8 sps:$4 sm:$0xff]  }
 0x1d3   :  { %v294_v25 = vpack.c.bf16 %v287_v24, %v286_v23  ;;  %v296_v33 = vpack.c.bf16 %v289_v32, %v288_v31  ;;  %v5172_v24 = vld [vmem:[%s6463_s5 + $0x120] ss:$8 sps:$4 sm:$0xff]   ;;  %v5175_v29 = vld [vmem:[%s6463_s5 + $0x130] ss:$8 sps:$4 sm:$0xff]   ;;  %v5183_v32 = vld [vmem:[%s6463_s5 + $0x154] ss:$8 sps:$4 sm:$0xff]  }
 0x1d4   :  { %v5178_v31 = vld [vmem:[%s6463_s5 + $0x140] ss:$8 sps:$4 sm:$0xff]  }
 0x1d5   :  { %466 = vmatmul.mubr.bf16.vlgmr.msra.gmra.mrb[0].mxu1 %v294_v25 }
 0x1d6   :  { %473 = vmatprep.mubr.bf16.mxu1 %v297_v28  ;;  %4682 = vmatpush3.bf16.msra.mxu1 %v5215_v48  ;;  %v5207_v48 = vld [vmem:[%s6463_s5 + $0x1d4] ss:$8 sps:$4 sm:$0xff]  }
 0x1d7   :  { %4683 = vmatprep.subr.bf16.mxu1 %v5216_v49  ;;  %v5205_v49 = vld [vmem:[%s6463_s5 + $0x1d0] ss:$8 sps:$4 sm:$0xff]  }
 0x1da   :  { %4684 = vmatpush3.bf16.msra.mxu1 %v5217_v50  ;;  %v5210_v50 = vld [vmem:[%s6463_s5 + $0x1e4] ss:$8 sps:$4 sm:$0xff]  }
 0x1db   :  { %4685 = vmatprep.subr.bf16.mxu1 %v5218_v51  ;;  %v5208_v51 = vld [vmem:[%s6463_s5 + $0x1e0] ss:$8 sps:$4 sm:$0xff]  }
 0x1dd   :  { %474 = vmatmul.mubr.bf16.gmra.mrb[4].mxu1 %v296_v33  ;;  %v5181_v33 = vld [vmem:[%s6463_s5 + $0x150] ss:$8 sps:$4 sm:$0xff]  }
 0x1de   :  { %4686 = vmatpush3.bf16.msra.mxu1 %v5220_v52  ;;  %v5213_v52 = vld [vmem:[%s6463_s5 + $0x1f4] ss:$8 sps:$4 sm:$0xff]  }
 0x1df   :  { %4687 = vmatprep.subr.bf16.mxu1 %v5222_v53  ;;  %v5211_v53 = vld [vmem:[%s6463_s5 + $0x1f0] ss:$8 sps:$4 sm:$0xff]  }
 0x1e2   :  { %4688 = vmatpush3.bf16.msra.mxu1 %v5224_v54  ;;  %v5219_v54 = vld [vmem:[#allocation11 + $0x240] sm:$0xff]  }
 0x2a8   :  { %v4669_v55 = vpop.f32.mrb[0].mxu1 }
 0x2a9   :  { %v4670_v57 = vpop.f32.mrb[1].mxu1 }
 0x2aa   :  { %v4671_v58 = vadd.f32 %v4670_v57, %v4669_v55  ;;  %v4672_v59 = vpop.f32.mrb[2].mxu1 }
 0x2ab   :  { %v4673_v60 = vpop.f32.mrb[3].mxu1 }
 0x2ac   :  { %v468_v61 = vadd.f32 %v4671_v58, %v4274_v56  ;;  %v4674_v62 = vadd.f32 %v4673_v60, %v4672_v59  ;;  %v5221_v58 = vld [vmem:[#allocation11 + $0x200] sm:$0xff]   ;;  %v5223_v60 = vld [vmem:[#allocation11 + $0x248] sm:$0xff]  }
 0x2ae   :  { %v482_v63 = vmax.f32 %v468_v61, 0.0  ;;  %v471_v0 = vadd.f32 %v4674_v62, %v4274_v56  ;;  %v5225_v62 = vld [vmem:[#allocation11 + $0x208] sm:$0xff]  }
 0x2b0   :  { %486 = vst [vmem:[#allocation3] sm:$0xff] %v482_v63  ;;  %v483_v1 = vmax.f32 %v471_v0, 0.0  ;;  %v4675_v2 = vpop.f32.mrb[4].mxu1 }
 0x2b1   :  { %v4676_v3 = vpop.f32.mrb[5].mxu1 }
 0x2b2   :  { %487 = vst [vmem:[#allocation3 + $0x8] sm:$0xff] %v483_v1  ;;  %v4677_v4 = vadd.f32 %v4676_v3, %v4675_v2  ;;  %v4678_v5 = vpop.f32.mrb[6].mxu1  ;;  %v502_v6 = vpack.c.bf16 %v483_v1, %v482_v63  ;;  %v5226_v1 = vld [vmem:[#allocation11 + $0xe0] sm:$0xff]   ;;  %v5227_v2 = vld [vmem:[#allocation11 + $0x250] sm:$0xff]  }
 0x2b3   :  { %v4679_v7 = vpop.f32.mrb[7].mxu1  ;;  %v5228_v3 = vld [vmem:[#allocation11 + $0xa0] sm:$0xff]   ;;  %4689 = vmatprep.subr.bf16.mxu1 %v5226_v1 }
 0x2b4   :  { %v476_v8 = vadd.f32 %v4677_v4, %v4274_v56  ;;  %v4680_v9 = vadd.f32 %v4679_v7, %v4678_v5  ;;  %v5229_v4 = vld [vmem:[#allocation11 + $0x210] sm:$0xff]   ;;  %4690 = vmatpush3.bf16.msra.mxu1 %v5228_v3  ;;  %v5230_v5 = vld [vmem:[#allocation11 + $0xe8] sm:$0xff]  }
 0x2b5   :  { %v5232_v7 = vld [vmem:[#allocation11 + $0xa8] sm:$0xff]   ;;  %4691 = vmatprep.subr.bf16.mxu1 %v5230_v5 }
 0x2b6   :  { %v484_v10 = vmax.f32 %v476_v8, 0.0  ;;  %v479_v11 = vadd.f32 %v4680_v9, %v4274_v56  ;;  %v5233_v8 = vld [vmem:[#allocation11 + $0x218] sm:$0xff]   ;;  %v5234_v9 = vld [vmem:[#allocation11 + $0xf0] sm:$0xff]  }
 0x2b7   :  { %v4451_v5 = vld [vmem:[%s6458_s0 + $0x20] sm:$0xff] }
 0x2b8   :  { %488 = vst [vmem:[#allocation3 + $0x10] sm:$0xff] %v484_v10  ;;  %v485_v12 = vmax.f32 %v479_v11, 0.0  ;;  %4692 = vmatpush3.bf16.msra.mxu1 %v5232_v7  ;;  %v5235_v10 = vld [vmem:[#allocation11 + $0x260] sm:$0xff]   ;;  %v5236_v11 = vld [vmem:[#allocation11 + $0xb0] sm:$0xff]  }
 0x2b9   :  { %v493_v13 = vld [vmem:[#allocation3 + $0x2] sm:$0xff]  ;;  %4693 = vmatprep.subr.bf16.mxu1 %v5234_v9  ;;  %v5254_v7 = vld [vmem:[#allocation11 + $0x60] sm:$0xff]  }
 0x2ba   :  { %489 = vst [vmem:[#allocation3 + $0x18] sm:$0xf] %v485_v12  ;;  %v499_v26 = vld [vmem:[#allocation3 + $0x6] sm:$0xff]  ;;  %v5237_v12 = vld [vmem:[#allocation11 + $0x220] sm:$0xff]  }
 0x2bb   :  { %v496_v57 = vld [vmem:[#allocation3 + $0x4] sm:$0xff] }
 0x2bc   :  { %4694 = vmatpush3.bf16.msra.mxu1 %v5236_v11  ;;  %v4452_v9 = vld [vmem:[%s6458_s0 + $0x28] sm:$0xff]  ;;  %v4453_v11 = vld [vmem:[%s6458_s0 + $0x30] sm:$0xff] }
 0x2bf   :  { %v494_v14 = vld [vmem:[#allocation3 + $0xa] sm:$0xff]  ;;  %v495_v15 = vld [vmem:[#allocation3 + $0x12] sm:$0x3f] }
 0x2c0   :  { %v503_v16 = vpack.c.bf16 %v494_v14, %v493_v13  ;;  %v507_v19 = vpack.c.bf16 %v495_v15, %v495_v15  ;;  %v492_v22 = vld [vmem:[#allocation3 + $0x10] sm:$0x3f]  ;;  %v5239_v14 = vld [vmem:[#allocation11 + $0x268] sm:$0xff]  }
 0x2c1   :  { %v500_v23 = vld [vmem:[#allocation3 + $0xe] sm:$0xff]  ;;  %v506_v25 = vpack.c.bf16 %v492_v22, %v492_v22  ;;  %v501_v56 = vld [vmem:[#allocation3 + $0x16] sm:$0x3f]  ;;  %v6127_v22 = vld [vmem:[%s6459_s1] sm:$0xf] }
 0x2c2   :  { %938 = vmatprep.mubr.bf16.mxu0 %v503_v16  ;;  %v505_v28 = vpack.c.bf16 %v500_v23, %v499_v26  ;;  %v497_v55 = vld [vmem:[#allocation3 + $0xc] sm:$0xff]  ;;  %v509_v61 = vpack.c.bf16 %v501_v56, %v501_v56  ;;  %v498_v63 = vld [vmem:[#allocation3 + $0x14] sm:$0x3f]  ;;  %v5241_v16 = vld [vmem:[#allocation11 + $0x228] sm:$0xff]   ;;  %v576_v23 = vlaneseq }
 0x2c3   :  { %939 = vmatmul.mubr.bf16.vlgmr.msra.gmra.mrb[4].mxu0 %v502_v6  ;;  %v504_v59 = vpack.c.bf16 %v497_v55, %v496_v57  ;;  %v508_v0 = vpack.c.bf16 %v498_v63, %v498_v63  ;;  %v5231_v6 = vld [vmem:[#allocation11 + $0x258] sm:$0xff]   ;;  %v5244_v57 = vld [vmem:[#allocation11] sm:$0xff]  }
 0x2c4   :  { %958 = vmatpush1.bf16.msra.mxu0 %v5166_v17  ;;  %948 = vmatprep.mubr.bf16.mxu0 %v507_v19  ;;  %v5238_v13 = vld [vmem:[#allocation11 + $0xf8] sm:$0xff]   ;;  %v5242_v17 = vld [vmem:[#allocation11 + $0x40] sm:$0xff]   ;;  %v5245_v19 = vld [vmem:[#allocation11 + $0x230] sm:$0xff]  }
 0x2c5   :  { %959 = vmatprep.subr.bf16.mxu0 %v5171_v18  ;;  %v5240_v15 = vld [vmem:[#allocation11 + $0xb8] sm:$0xff]   ;;  %4695 = vmatprep.subr.bf16.mxu1 %v5238_v13  ;;  %v5243_v18 = vld [vmem:[#allocation11 + $0x270] sm:$0xff]   ;;  %v4454_v13 = vld [vmem:[%s6458_s0 + $0x38] sm:$0x7f] }
 0x2c6   :  { %4696 = vmatpush3.bf16.msra.mxu1 %v5240_v15  ;;  %v574_v26 = vld [vmem:[#allocation9] sm:$0x3]  ;;  %v5259_v15 = vld [vmem:[#allocation11 + $0x30] sm:$0xff]  }
 0x2c7   :  { %4703 = vmatprep.subr.bf16.mxu1 %v5242_v17 }
 0x2c8   :  { %960 = vmatpush1.bf16.msra.mxu0 %v5169_v20  ;;  %v5247_v20 = vld [vmem:[#allocation11 + $0x278] sm:$0xff]  }
 0x2c9   :  { %961 = vmatprep.subr.bf16.mxu0 %v5174_v21  ;;  %v5249_v21 = vld [vmem:[#allocation11 + $0x238] sm:$0xff]  }
 0x2cb   :  { %949 = vmatmul.mubr.bf16.gmra.mrb[8].mxu0 %v506_v25 }
 0x2cc   :  { %962 = vmatpush1.bf16.msra.mxu0 %v5172_v24  ;;  %989 = vmatprep.mubr.bf16.mxu0 %v505_v28  ;;  %v577_v24 = vshrl.u32 %v576_v23, 7 }
 0x2cd   :  { %963 = vmatprep.subr.bf16.mxu0 %v5177_v27 }
 0x2ce   :  { %v6131_v25 = vsub.s32 0, %v577_v24  ;;  %v6133_v27 = vsub.s32 1, %v577_v24  ;;  %v5264_v24 = vld [vmem:[#allocation11 + $0x148] sm:$0xff]  }
 0x2d0   :  { %964 = vmatpush1.bf16.msra.mxu0 %v5175_v29  ;;  %v579_v28 = vrot.slane %v574_v26, %v6131_v25  ;;  %v583_v29 = vrot.slane %v574_v26, %v6133_v27 }
 0x2d1   :  { %965 = vmatprep.subr.bf16.mxu0 %v5180_v30 }
 0x2d4   :  { %966 = vmatpush1.bf16.msra.mxu0 %v5178_v31 }
 0x2d5   :  { %967 = vmatprep.subr.bf16.mxu0 %v5183_v32 }
 0x2d8   :  { %968 = vmatpush1.bf16.msra.mxu0 %v5181_v33 }
 0x2d9   :  { %969 = vmatprep.subr.bf16.mxu0 %v5186_v34 }
 0x2dc   :  { %970 = vmatpush1.bf16.msra.mxu0 %v5184_v35 }
 0x2dd   :  { %971 = vmatprep.subr.bf16.mxu0 %v5189_v36 }
 0x2e0   :  { %972 = vmatpush1.bf16.msra.mxu0 %v5187_v37 }
 0x2e1   :  { %973 = vmatprep.subr.bf16.mxu0 %v5192_v38 }
 0x2e4   :  { %974 = vmatpush1.bf16.msra.mxu0 %v5190_v39 }
 0x2e5   :  { %975 = vmatprep.subr.bf16.mxu0 %v5195_v40 }
 0x2e8   :  { %976 = vmatpush1.bf16.msra.mxu0 %v5193_v41 }
 0x2e9   :  { %977 = vmatprep.subr.bf16.mxu0 %v5198_v42 }
 0x2ec   :  { %978 = vmatpush1.bf16.msra.mxu0 %v5196_v43 }
 0x2ed   :  { %979 = vmatprep.subr.bf16.mxu0 %v5201_v44 }
 0x2f0   :  { %980 = vmatpush1.bf16.msra.mxu0 %v5199_v45 }
 0x2f1   :  { %981 = vmatprep.subr.bf16.mxu0 %v5204_v46 }
 0x2f4   :  { %982 = vmatpush1.bf16.msra.mxu0 %v5202_v47 }
 0x2f5   :  { %983 = vmatprep.subr.bf16.mxu0 %v5207_v48 }
 0x2f8   :  { %984 = vmatpush1.bf16.msra.mxu0 %v5205_v49 }
 0x2f9   :  { %985 = vmatprep.subr.bf16.mxu0 %v5210_v50 }
 0x2fc   :  { %986 = vmatpush1.bf16.msra.mxu0 %v5208_v51 }
 0x2fd   :  { %987 = vmatprep.subr.bf16.mxu0 %v5213_v52 }
 0x300   :  { %988 = vmatpush1.bf16.msra.mxu0 %v5211_v53 }
 0x301   :  { %4769 = vmatprep.subr.bf16.mxu0 %v5219_v54 }
 0x303   :  { %990 = vmatmul.mubr.bf16.vlgmr.msra.gmra.mrb[4].mxu0 %v504_v59 }
 0x304   :  { %999 = vmatprep.mubr.bf16.mxu0 %v509_v61  ;;  %4770 = vmatpush3.bf16.msra.mxu0 %v5221_v58  ;;  %v5246_v58 = vld [vmem:[#allocation11 + $0x48] sm:$0xff]   ;;  %v5250_v61 = vld [vmem:[#allocation11 + $0x50] sm:$0xff]  }
 0x305   :  { %4771 = vmatprep.subr.bf16.mxu0 %v5223_v60  ;;  %v5248_v60 = vld [vmem:[#allocation11 + $0x8] sm:$0xff]  }
 0x308   :  { %4772 = vmatpush3.bf16.msra.mxu0 %v5225_v62 }
 0x309   :  { %4773 = vmatprep.subr.bf16.mxu0 %v5227_v2  ;;  %v5251_v2 = vld [vmem:[#allocation11 + $0x10] sm:$0xff]  }
 0x30b   :  { %1000 = vmatmul.mubr.bf16.gmra.mrb[8].mxu0 %v508_v0 }
 0x30c   :  { %4774 = vmatpush3.bf16.msra.mxu0 %v5229_v4  ;;  %v5252_v4 = vld [vmem:[#allocation11 + $0x58] sm:$0xff]  }
 0x30d   :  { %4775 = vmatprep.subr.bf16.mxu0 %v5231_v6  ;;  %v5253_v6 = vld [vmem:[#allocation11 + $0x18] sm:$0xff]  }
 0x310   :  { %4776 = vmatpush3.bf16.msra.mxu0 %v5233_v8  ;;  %v5255_v8 = vld [vmem:[#allocation11 + $0x20] sm:$0xff]  }
 0x311   :  { %4777 = vmatprep.subr.bf16.mxu0 %v5235_v10  ;;  %v5256_v10 = vld [vmem:[#allocation11 + $0x68] sm:$0xff]  }
 0x314   :  { %4778 = vmatpush3.bf16.msra.mxu0 %v5237_v12  ;;  %v5257_v12 = vld [vmem:[#allocation11 + $0x28] sm:$0xff]  }
 0x315   :  { %4779 = vmatprep.subr.bf16.mxu0 %v5239_v14  ;;  %v5258_v14 = vld [vmem:[#allocation11 + $0x70] sm:$0xff]  }
 0x318   :  { %4780 = vmatpush3.bf16.msra.mxu0 %v5241_v16  ;;  %v5260_v16 = vld [vmem:[#allocation11 + $0x78] sm:$0xff]  }
 0x319   :  { %4781 = vmatprep.subr.bf16.mxu0 %v5243_v18  ;;  %v5261_v18 = vld [vmem:[#allocation11 + $0x38] sm:$0xff]  }
 0x31c   :  { %4782 = vmatpush3.bf16.msra.mxu0 %v5245_v19 }
 0x31d   :  { %4783 = vmatprep.subr.bf16.mxu0 %v5247_v20  ;;  %v5262_v20 = vld [vmem:[#allocation11 + $0x140] sm:$0xff]  }
 0x320   :  { %4784 = vmatpush3.bf16.msra.mxu0 %v5249_v21 }
 0x321   :  { %4995 = vmatprep.subr.msk.mxu0 %vm139_vm0, %v6127_v22 }
 0x3d6   :  { %v991_v30 = vpop.f32.mrb[4].mxu0 }
 0x3d7   :  { %v5023_v31 = vadd.f32 %v991_v30, %v579_v28  ;;  %v993_v32 = vpop.f32.mrb[5].mxu0  ;;  %v5267_v30 = vld [vmem:[#allocation11 + $0x110] sm:$0xff]  }
 0x3d8   :  { %v5024_v33 = vadd.f32 %v993_v32, %v583_v29  ;;  %v995_v34 = vpop.f32.mrb[6].mxu0  ;;  %v5269_v32 = vld [vmem:[#allocation11 + $0x118] sm:$0xff]  }
 0x3d9   :  { %v1008_v35 = vmax.f32 %v5023_v31, 0.0  ;;  %v5025_v36 = vadd.f32 %v995_v34, %v579_v28  ;;  %v997_v37 = vpop.f32.mrb[7].mxu0  ;;  %v5268_v31 = vld [vmem:[#allocation11 + $0x158] sm:$0xff]   ;;  %v5271_v34 = vld [vmem:[#allocation11 + $0x120] sm:$0xff]  }
 0x3da   :  { %v1009_v38 = vmax.f32 %v5024_v33, 0.0  ;;  %v5026_v39 = vadd.f32 %v997_v37, %v583_v29  ;;  %v5270_v33 = vld [vmem:[#allocation11 + $0x160] sm:$0xff]   ;;  %v5274_v37 = vld [vmem:[#allocation11 + $0x170] sm:$0xff]  }
 0x3db   :  { %1014 = vst [vmem:[#allocation4] sm:$0xff] %v1008_v35  ;;  %v1010_v40 = vmax.f32 %v5025_v36, 0.0  ;;  %v5272_v35 = vld [vmem:[#allocation11 + $0x168] sm:$0xff]  }
 0x3dc   :  { %1015 = vst [vmem:[#allocation4 + $0x8] sm:$0xff] %v1009_v38  ;;  %v1011_v41 = vmax.f32 %v5026_v39, 0.0  ;;  %v5273_v36 = vld [vmem:[#allocation11 + $0x128] sm:$0xff]   ;;  %v5275_v38 = vld [vmem:[#allocation11 + $0x130] sm:$0xff]   ;;  %v5276_v39 = vld [vmem:[#allocation11 + $0x178] sm:$0xff]  }
 0x3dd   :  { %1016 = vst [vmem:[#allocation4 + $0x10] sm:$0xff] %v1010_v40 }
 0x3de   :  { %1017 = vst [vmem:[#allocation4 + $0x18] sm:$0xff] %v1011_v41  ;;  %v1001_v42 = vpop.f32.mrb[8].mxu0  ;;  %v5277_v41 = vld [vmem:[#allocation11 + $0x138] sm:$0xff]  }
 0x3df   :  { %v5027_v43 = vadd.f32 %v1001_v42, %v579_v28  ;;  %v1003_v44 = vpop.f32.mrb[9].mxu0  ;;  %v5265_v28 = vld [vmem:[#allocation11 + $0x108] sm:$0xff]  }
 0x3e0   :  { %v5028_v45 = vadd.f32 %v1003_v44, %v583_v29  ;;  %v1005_v46 = vpop.f32.mrb[10].mxu0  ;;  %v5266_v29 = vld [vmem:[#allocation11 + $0x150] sm:$0xff]  }
 0x3e1   :  { %v1012_v47 = vmax.f32 %v5027_v43, 0.0  ;;  %v1006_v48 = vpop.f32.mrb[11].mxu0  ;;  %v5278_v43 = vld [vmem:[#allocation11 + $0x1c0] sm:$0xff]  }
 0x3e2   :  { %v1013_v49 = vmax.f32 %v5028_v45, 0.0  ;;  %v5279_v45 = vld [vmem:[#allocation11 + $0x180] sm:$0xff]  }
 0x3e3   :  { %1018 = vst [vmem:[#allocation4 + $0x20] sm:$0x3f] %v1012_v47  ;;  %v1067_v50 = vld [vmem:[#allocation4 + $0x4] ss:$8 sm:$0x3] }
 0x3e4   :  { %v1020_v51 = vld [vmem:[#allocation4] ss:$8 sm:$0x3]  ;;  %1019 = vst [vmem:[#allocation4 + $0x28] sm:$0x3f] %v1013_v49  ;;  %v1076_v52 = vrot.slane %v1067_v50, %v6133_v27  ;;  %v1072_v53 = vrot.slane %v1067_v50, %v6131_v25 }
 0x3e5   :  { %v1029_v54 = vrot.slane %v1020_v51, %v6133_v27  ;;  %v1387_v17 = vld [vmem:[#allocation4 + $0x10] ss:$8 sm:$0x3]  ;;  %v1025_v19 = vrot.slane %v1020_v51, %v6131_v25  ;;  %v1572_v40 = vld [vmem:[#allocation4 + $0x14] ss:$8 sm:$0x3] }
 0x3e6   :  { %v1080_v55 = vpack.c.bf16 %v1076_v52, %v1076_v52  ;;  %v1079_v56 = vpack.c.bf16 %v1072_v53, %v1072_v53  ;;  %v1396_v21 = vrot.slane %v1387_v17, %v6133_v27  ;;  %v1392_v42 = vrot.slane %v1387_v17, %v6131_v25  ;;  %v5280_v47 = vld [vmem:[#allocation11 + $0x1c8] sm:$0xff]   ;;  %v5282_v50 = vld [vmem:[#allocation11 + $0x1d0] sm:$0xff]   ;;  %v5284_v52 = vld [vmem:[#allocation11 + $0x1d8] sm:$0xff]  }
 0x3e7   :  { %v1033_v59 = vpack.c.bf16 %v1029_v54, %v1029_v54  ;;  %v1032_v23 = vpack.c.bf16 %v1025_v19, %v1025_v19  ;;  %v1581_v44 = vrot.slane %v1572_v40, %v6133_v27  ;;  %v5281_v49 = vld [vmem:[#allocation11 + $0x188] sm:$0xff]   ;;  %v5283_v51 = vld [vmem:[#allocation11 + $0x190] sm:$0xff]   ;;  %v5285_v53 = vld [vmem:[#allocation11 + $0x198] sm:$0xff]  }
 0x3e8   :  { %1242 = vmatprep.mubr.bf16.mxu1 %v1080_v55  ;;  %v1400_v26 = vpack.c.bf16 %v1396_v21, %v1396_v21  ;;  %v1399_v46 = vpack.c.bf16 %v1392_v42, %v1392_v42  ;;  %v5286_v54 = vld [vmem:[#allocation11 + $0x1e0] sm:$0xff]   ;;  %v5308_v17 = vld [vmem:[#allocation11 + $0x2f8] sm:$0xff]   ;;  %v5310_v21 = vld [vmem:[%s6461_s3 + $0x40] sm:$0xff]  }
 0x3e9   :  { %1243 = vmatmul.mubr.bf16.vlgmr.msra.gmra.mrb[8].mxu1 %v1079_v56  ;;  %v1585_v48 = vpack.c.bf16 %v1581_v44, %v1581_v44  ;;  %v5287_v55 = vld [vmem:[#allocation11 + $0x1a0] sm:$0xff]   ;;  %v5288_v56 = vld [vmem:[#allocation11 + $0x1e8] sm:$0xff]  }
 0x3ea   :  { %4704 = vmatpush3.bf16.msra.mxu1 %v5244_v57  ;;  %1378 = vmatprep.mubr.bf16.mxu1 %v1033_v59  ;;  %v5289_v57 = vld [vmem:[#allocation11 + $0x1a8] sm:$0xff]   ;;  %v5291_v59 = vld [vmem:[#allocation11 + $0x1b0] sm:$0xff]  }
 0x3eb   :  { %4705 = vmatprep.subr.bf16.mxu1 %v5246_v58  ;;  %v1757_v62 = vld [vmem:[#allocation4 + $0x20] ss:$8 sm:$0x3] }
 0x3ec   :  { %v1766_v63 = vrot.slane %v1757_v62, %v6133_v27  ;;  %v1762_v0 = vrot.slane %v1757_v62, %v6131_v25  ;;  %v5290_v58 = vld [vmem:[#allocation11 + $0x1f0] sm:$0xff]   ;;  %v5293_v62 = vld [vmem:[#allocation11 + $0x1b8] sm:$0xff]   ;;  %v4455_v44 = vld [vmem:[%s6460_s2] ss:$0 sm:$0xff] }
 0x3ed   :  { %v5319_v42 = vld [vmem:[%s6461_s3 + $0x20] sm:$0xff]  }
 0x3ee   :  { %4706 = vmatpush3.bf16.msra.mxu1 %v5248_v60  ;;  %v1770_v1 = vpack.c.bf16 %v1766_v63, %v1766_v63  ;;  %v1769_v3 = vpack.c.bf16 %v1762_v0, %v1762_v0  ;;  %v5292_v60 = vld [vmem:[#allocation11 + $0x1f8] sm:$0xff]   ;;  %v1577_v63 = vrot.slane %v1572_v40, %v6131_v25  ;;  %v5294_v0 = vld [vmem:[#allocation11 + $0x2c0] sm:$0xff]  }
 0x3ef   :  { %4707 = vmatprep.subr.bf16.mxu1 %v5250_v61  ;;  %v1942_v61 = vld [vmem:[#allocation4 + $0x24] ss:$8 sm:$0x3] }
 0x3f0   :  { %1932 = vmatprep.mubr.bf16.mxu0 %v1770_v1  ;;  %v1951_v1 = vrot.slane %v1942_v61, %v6133_v27  ;;  %v1947_v19 = vrot.slane %v1942_v61, %v6131_v25  ;;  %v5325_v61 = vld [vmem:[%s6461_s3 + $0x38] sm:$0xff]  }
 0x3f1   :  { %1933 = vmatmul.mubr.bf16.vlgmr.msra.gmra.mrb[12].mxu0 %v1769_v3  ;;  %v1584_v3 = vpack.c.bf16 %v1577_v63, %v1577_v63 }
 0x3f2   :  { %4708 = vmatpush3.bf16.msra.mxu1 %v5251_v2  ;;  %4996 = vmatpush3.msk.msra.mxu0 %vm139_vm0, %v6127_v22  ;;  %v5263_v22 = vld [vmem:[#allocation11 + $0x100] sm:$0xff]  }
 0x3f3   :  { %4709 = vmatprep.subr.bf16.mxu1 %v5252_v4  ;;  %4997 = vmatprep.mubr.msk.f32.mxu0 %vm126_vm1, %v4451_v5  ;;  %v5295_v2 = vld [vmem:[#allocation11 + $0x280] sm:$0xff]   ;;  %v5296_v4 = vld [vmem:[#allocation11 + $0x2c8] sm:$0xff]   ;;  %v1955_v5 = vpack.c.bf16 %v1951_v1, %v1951_v1 }
 0x3f4   :  { %4818 = vmatprep.subr.bf16.mxu0 %v5310_v21  ;;  %v5332_v21 = vld [vmem:[%s6463_s5 + $0x20] ss:$8 sps:$4 sm:$0xff]  }
 0x3f6   :  { %4710 = vmatpush3.bf16.msra.mxu1 %v5253_v6  ;;  %v5297_v6 = vld [vmem:[#allocation11 + $0x288] sm:$0xff]  }
 0x3f7   :  { %4711 = vmatprep.subr.bf16.mxu1 %v5254_v7  ;;  %v5298_v7 = vld [vmem:[#allocation11 + $0x2d0] sm:$0xff]  }
 0x3f9   :  { %4998 = vmatmul.mubr.msk.f32.vlgmr.msra.gmra.mrb[16].mxu0 %vm126_vm1, %v4452_v9  ;;  %v5300_v9 = vld [vmem:[#allocation11 + $0x2d8] sm:$0xff]  }
 0x3fa   :  { %4712 = vmatpush3.bf16.msra.mxu1 %v5255_v8  ;;  %5000 = vmatprep.mubr.msk.f32.mxu0 %vm126_vm1, %v4453_v11  ;;  %v5299_v8 = vld [vmem:[#allocation11 + $0x290] sm:$0xff]   ;;  %v5302_v11 = vld [vmem:[#allocation11 + $0x2e0] sm:$0xff]  }
 0x3fb   :  { %4713 = vmatprep.subr.bf16.mxu1 %v5256_v10  ;;  %v5301_v10 = vld [vmem:[#allocation11 + $0x298] sm:$0xff]  }
 0x3fd   :  { %5001 = vmatmul.mubr.msk.f32.gmra.mrb[18].mxu0 %vm126_vm1, %v4454_v13  ;;  %v5304_v13 = vld [vmem:[#allocation11 + $0x2e8] sm:$0xff]  }
 0x3fe   :  { %4714 = vmatpush3.bf16.msra.mxu1 %v5257_v12  ;;  %v5303_v12 = vld [vmem:[#allocation11 + $0x2a0] sm:$0xff]  }
 0x3ff   :  { %4715 = vmatprep.subr.bf16.mxu1 %v5258_v14  ;;  %v5305_v14 = vld [vmem:[#allocation11 + $0x2a8] sm:$0xff]  }
 0x402   :  { %4716 = vmatpush3.bf16.msra.mxu1 %v5259_v15  ;;  %v5306_v15 = vld [vmem:[#allocation11 + $0x2f0] sm:$0xff]  }
 0x403   :  { %4717 = vmatprep.subr.bf16.mxu1 %v5260_v16  ;;  %v5307_v16 = vld [vmem:[#allocation11 + $0x2b0] sm:$0xff]  }
 0x406   :  { %4718 = vmatpush3.bf16.msra.mxu1 %v5261_v18  ;;  %v5309_v18 = vld [vmem:[#allocation11 + $0x2b8] sm:$0xff]  }
 0x407   :  { %4725 = vmatprep.subr.bf16.mxu1 %v5262_v20  ;;  %v1954_v20 = vpack.c.bf16 %v1947_v19, %v1947_v19  ;;  %v5329_v19 = vld [vmem:[%s6463_s5 + $0x10] ss:$8 sps:$4 sm:$0xff]  }
 0x409   :  { %1379 = vmatmul.mubr.bf16.vlgmr.msra.gmra.mrb[12].mxu1 %v1032_v23 }
 0x40a   :  { %4726 = vmatpush3.bf16.msra.mxu1 %v5263_v22  ;;  %1562 = vmatprep.mubr.bf16.mxu1 %v1400_v26  ;;  %v5311_v22 = vld [vmem:[%s6461_s3] sm:$0xff]   ;;  %v5312_v26 = vld [vmem:[%s6461_s3 + $0x48] sm:$0xff]  }
 0x40b   :  { %4727 = vmatprep.subr.bf16.mxu1 %v5264_v24  ;;  %4819 = vmatpush3.bf16.msra.mxu0 %v5311_v22  ;;  %v5337_v22 = vld [vmem:[%s6463_s5 + $0x34] ss:$8 sps:$4 sm:$0xff]  }
 0x40c   :  { %4820 = vmatprep.subr.bf16.mxu0 %v5312_v26  ;;  %v5338_v26 = vld [vmem:[%s6463_s5 + $0x40] ss:$8 sps:$4 sm:$0xff]  }
 0x40e   :  { %4728 = vmatpush3.bf16.msra.mxu1 %v5265_v28 }
 0x40f   :  { %4729 = vmatprep.subr.bf16.mxu1 %v5266_v29 }
 0x412   :  { %4730 = vmatpush3.bf16.msra.mxu1 %v5267_v30  ;;  %v5313_v30 = vld [vmem:[%s6461_s3 + $0x8] sm:$0xff]  }
 0x413   :  { %4731 = vmatprep.subr.bf16.mxu1 %v5268_v31  ;;  %4821 = vmatpush3.bf16.msra.mxu0 %v5313_v30  ;;  %v5346_v30 = vld [vmem:[%s6463_s5 + $0x64] ss:$8 sps:$4 sm:$0xff]  }
 0x416   :  { %4732 = vmatpush3.bf16.msra.mxu1 %v5269_v32  ;;  %v5314_v32 = vld [vmem:[%s6461_s3 + $0x50] sm:$0xff]  }
 0x417   :  { %4733 = vmatprep.subr.bf16.mxu1 %v5270_v33  ;;  %v5315_v33 = vld [vmem:[%s6461_s3 + $0x10] sm:$0xff]   ;;  %4822 = vmatprep.subr.bf16.mxu0 %v5314_v32 }
 0x418   :  { %4823 = vmatpush3.bf16.msra.mxu0 %v5315_v33  ;;  %v5349_v32 = vld [vmem:[%s6463_s5 + $0x74] ss:$8 sps:$4 sm:$0xff]  }
 0x41a   :  { %4734 = vmatpush3.bf16.msra.mxu1 %v5271_v34  ;;  %v5316_v34 = vld [vmem:[%s6461_s3 + $0x58] sm:$0xff]  }
 0x41b   :  { %4735 = vmatprep.subr.bf16.mxu1 %v5272_v35  ;;  %4824 = vmatprep.subr.bf16.mxu0 %v5316_v34 }
 0x41e   :  { %4736 = vmatpush3.bf16.msra.mxu1 %v5273_v36  ;;  %v5317_v36 = vld [vmem:[%s6461_s3 + $0x18] sm:$0xff]  }
 0x41f   :  { %4737 = vmatprep.subr.bf16.mxu1 %v5274_v37  ;;  %4825 = vmatpush3.bf16.msra.mxu0 %v5317_v36 }
 0x422   :  { %4738 = vmatpush3.bf16.msra.mxu1 %v5275_v38  ;;  %v5318_v38 = vld [vmem:[%s6461_s3 + $0x60] sm:$0xff]  }
 0x423   :  { %4739 = vmatprep.subr.bf16.mxu1 %v5276_v39  ;;  %4826 = vmatprep.subr.bf16.mxu0 %v5318_v38  ;;  %v5352_v38 = vld [vmem:[%s6463_s5 + $0x84] ss:$8 sps:$4 sm:$0xff]  }
 0x424   :  { %4827 = vmatpush3.bf16.msra.mxu0 %v5319_v42  ;;  %v5350_v42 = vld [vmem:[%s6463_s5 + $0x80] ss:$8 sps:$4 sm:$0xff]  }
 0x426   :  { %4740 = vmatpush3.bf16.msra.mxu1 %v5277_v41 }
 0x427   :  { %4747 = vmatprep.subr.bf16.mxu1 %v5278_v43  ;;  %v5320_v43 = vld [vmem:[%s6461_s3 + $0x68] sm:$0xff]  }
 0x428   :  { %4828 = vmatprep.subr.bf16.mxu0 %v5320_v43  ;;  %v5355_v43 = vld [vmem:[%s6463_s5 + $0x94] ss:$8 sps:$4 sm:$0xff]  }
 0x429   :  { %1563 = vmatmul.mubr.bf16.vlgmr.msra.gmra.mrb[16].mxu1 %v1399_v46  ;;  %v5321_v46 = vld [vmem:[%s6461_s3 + $0x28] sm:$0xff]  }
 0x42a   :  { %4748 = vmatpush3.bf16.msra.mxu1 %v5279_v45  ;;  %1747 = vmatprep.mubr.bf16.mxu1 %v1585_v48 }
 0x42b   :  { %4749 = vmatprep.subr.bf16.mxu1 %v5280_v47  ;;  %4829 = vmatpush3.bf16.msra.mxu0 %v5321_v46 }
 0x42e   :  { %4750 = vmatpush3.bf16.msra.mxu1 %v5281_v49  ;;  %v5322_v49 = vld [vmem:[%s6461_s3 + $0x70] sm:$0xff]  }
 0x42f   :  { %4751 = vmatprep.subr.bf16.mxu1 %v5282_v50  ;;  %4830 = vmatprep.subr.bf16.mxu0 %v5322_v49 }
 0x432   :  { %4752 = vmatpush3.bf16.msra.mxu1 %v5283_v51 }
 0x433   :  { %4753 = vmatprep.subr.bf16.mxu1 %v5284_v52 }
 0x436   :  { %4754 = vmatpush3.bf16.msra.mxu1 %v5285_v53 }
 0x437   :  { %4755 = vmatprep.subr.bf16.mxu1 %v5286_v54  ;;  %v5323_v54 = vld [vmem:[%s6461_s3 + $0x30] sm:$0xff]  }
 0x438   :  { %4831 = vmatpush3.bf16.msra.mxu0 %v5323_v54 }
 0x43a   :  { %4756 = vmatpush3.bf16.msra.mxu1 %v5287_v55 }
 0x43b   :  { %4757 = vmatprep.subr.bf16.mxu1 %v5288_v56 }
 0x43e   :  { %4758 = vmatpush3.bf16.msra.mxu1 %v5289_v57 }
 0x43f   :  { %4759 = vmatprep.subr.bf16.mxu1 %v5290_v58 }
 0x442   :  { %4760 = vmatpush3.bf16.msra.mxu1 %v5291_v59 }
 0x443   :  { %4761 = vmatprep.subr.bf16.mxu1 %v5292_v60  ;;  %v5324_v60 = vld [vmem:[%s6461_s3 + $0x78] sm:$0xff]  }
 0x444   :  { %4832 = vmatprep.subr.bf16.mxu0 %v5324_v60 }
 0x445   :  { %4833 = vmatpush3.bf16.msra.mxu0 %v5325_v61 }
 0x446   :  { %4762 = vmatpush3.bf16.msra.mxu1 %v5293_v62 }
 0x447   :  { %4791 = vmatprep.subr.bf16.mxu1 %v5294_v0 }
 0x449   :  { %1748 = vmatmul.mubr.bf16.vlgmr.msra.gmra.mrb[20].mxu1 %v1584_v3 }
 0x44a   :  { %4792 = vmatpush3.bf16.msra.mxu1 %v5295_v2  ;;  %2117 = vmatprep.mubr.bf16.mxu1 %v1955_v5 }
 0x44b   :  { %4793 = vmatprep.subr.bf16.mxu1 %v5296_v4 }
 0x44e   :  { %4794 = vmatpush3.bf16.msra.mxu1 %v5297_v6 }
 0x44f   :  { %4795 = vmatprep.subr.bf16.mxu1 %v5298_v7 }
 0x452   :  { %4796 = vmatpush3.bf16.msra.mxu1 %v5299_v8 }
 0x453   :  { %4797 = vmatprep.subr.bf16.mxu1 %v5300_v9 }
 0x456   :  { %4798 = vmatpush3.bf16.msra.mxu1 %v5301_v10 }
 0x457   :  { %4799 = vmatprep.subr.bf16.mxu1 %v5302_v11 }
 0x45a   :  { %4800 = vmatpush3.bf16.msra.mxu1 %v5303_v12 }
 0x45b   :  { %4801 = vmatprep.subr.bf16.mxu1 %v5304_v13 }
 0x45e   :  { %4802 = vmatpush3.bf16.msra.mxu1 %v5305_v14  ;;  %v5326_v14 = vld [vmem:[%s6463_s5] ss:$8 sps:$4 sm:$0xff]  }
 0x45f   :  { %4803 = vmatprep.subr.bf16.mxu1 %v5306_v15  ;;  %v5328_v15 = vld [vmem:[%s6463_s5 + $0x4] ss:$8 sps:$4 sm:$0xff]  }
 0x462   :  { %4804 = vmatpush3.bf16.msra.mxu1 %v5307_v16 }
 0x463   :  { %4805 = vmatprep.subr.bf16.mxu1 %v5308_v17 }
 0x466   :  { %4806 = vmatpush3.bf16.msra.mxu1 %v5309_v18  ;;  %v5331_v18 = vld [vmem:[%s6463_s5 + $0x14] ss:$8 sps:$4 sm:$0xff]  }
 0x467   :  { %2916 = vmatprep.subr.bf16.mxu1 %v5328_v15 }
 0x469   :  { %2118 = vmatmul.mubr.bf16.vlgmr.msra.gmra.mrb[24].mxu1 %v1954_v20  ;;  %v5334_v20 = vld [vmem:[%s6463_s5 + $0x24] ss:$8 sps:$4 sm:$0xff]  }
 0x46a   :  { %2917 = vmatpush1.bf16.msra.mxu1 %v5326_v14 }
 0x46b   :  { %2918 = vmatprep.subr.bf16.mxu1 %v5331_v18 }
 0x46e   :  { %2919 = vmatpush1.bf16.msra.mxu1 %v5329_v19 }
 0x46f   :  { %2920 = vmatprep.subr.bf16.mxu1 %v5334_v20 }
 0x472   :  { %2921 = vmatpush1.bf16.msra.mxu1 %v5332_v21 }
 0x473   :  { %2922 = vmatprep.subr.bf16.mxu1 %v5337_v22 }
 0x4bc   :  { %v4697_v23 = vpop.f32.mrb[8].mxu1 }
 0x4bd   :  { %v4698_v24 = vpop.f32.mrb[9].mxu1 }
 0x4be   :  { %v6176_v28 = vadd.f32 %v4698_v24, %v4697_v23  ;;  %v4700_v29 = vpop.f32.mrb[10].mxu1  ;;  %v5335_v23 = vld [vmem:[%s6463_s5 + $0x30] ss:$8 sps:$4 sm:$0xff]   ;;  %v5340_v24 = vld [vmem:[%s6463_s5 + $0x44] ss:$8 sps:$4 sm:$0xff]  }
 0x4bf   :  { %v4701_v31 = vpop.f32.mrb[11].mxu1  ;;  %2923 = vmatpush1.bf16.msra.mxu1 %v5335_v23  ;;  %v5341_v29 = vld [vmem:[%s6463_s5 + $0x50] ss:$8 sps:$4 sm:$0xff]  }
 0x4c0   :  { %2924 = vmatprep.subr.bf16.mxu1 %v5340_v24  ;;  %v5344_v31 = vld [vmem:[%s6463_s5 + $0x60] ss:$8 sps:$4 sm:$0xff]  }
 0x4c3   :  { %2925 = vmatpush1.bf16.msra.mxu1 %v5338_v26  ;;  %v5358_v26 = vld [vmem:[%s6463_s5 + $0xa4] ss:$8 sps:$4 sm:$0xff]  }
 0x4c4   :  { %v4785_v35 = vpop.f32.mrb[12].mxu0 }
 0x4c5   :  { %v4786_v37 = vpop.f32.mrb[13].mxu0 }
 0x4c6   :  { %v6196_v39 = vadd.f32 %v4786_v37, %v4785_v35  ;;  %v4788_v40 = vpop.f32.mrb[14].mxu0  ;;  %v5347_v35 = vld [vmem:[%s6463_s5 + $0x70] ss:$8 sps:$4 sm:$0xff]  }
 0x4c7   :  { %v4789_v41 = vpop.f32.mrb[15].mxu0 }
 0x4cc   :  { %v4999_v45 = vpop.f32.mrb[16].mxu0 }
 0x4cd   :  { %v2227_v47 = vadd.f32 %v4999_v45, %v4455_v44  ;;  %v2221_v48 = vpop.f32.mrb[17].mxu0 }
 0x4ce   :  { %v2222_v50 = vadd.f32 %v4455_v44, %v2221_v48 }
 0x4cf   :  { %v2241_v51 = vmax.f32 %v2227_v47, 0.0 }
 0x4d0   :  { %v2240_v52 = vmax.f32 %v2222_v50, 0.0  ;;  %v5002_v53 = vpop.f32.mrb[18].mxu0 }
 0x4d1   :  { %2245 = vst.msk [vmem:[#allocation2 + $0x8] sm:$0xff] %vm232_vm2, %v2241_v51  ;;  %v2237_v55 = vadd.f32 %v5002_v53, %v4455_v44  ;;  %v2231_v56 = vpop.f32.mrb[19].mxu0 }
 0x4d2   :  { %2244 = vst.msk [vmem:[#allocation2] sm:$0xff] %vm232_vm2, %v2240_v52  ;;  %v2232_v57 = vadd.f32 %v4455_v44, %v2231_v56  ;;  %v5353_v44 = vld [vmem:[%s6463_s5 + $0x90] ss:$8 sps:$4 sm:$0xff]  }
 0x4d3   :  { %v2243_v58 = vmax.f32 %v2237_v55, 0.0 }
 0x4d4   :  { %v2242_v59 = vmax.f32 %v2232_v57, 0.0 }
 0x4d5   :  { %2247 = vst.msk [vmem:[#allocation2 + $0x18] sm:$0x7f] %vm236_vm3, %v2243_v58 }
 0x4d6   :  { %2246 = vst.msk [vmem:[#allocation2 + $0x10] sm:$0xff] %vm232_vm2, %v2242_v59 }
 0x4d9   :  { %v2260_v63 = vld [vmem:[#allocation2 + $0x3] sm:$0xff] }
 0x4da   :  { %v2252_v2 = vld [vmem:[#allocation2 + $0x1] sm:$0xff] }
 0x4dc   :  { %v4719_v62 = vpop.f32.mrb[12].mxu1  ;;  %v2263_v8 = vld [vmem:[#allocation2 + $0x1b] sm:$0xf] }
 0x4dd   :  { %v4720_v0 = vpop.f32.mrb[13].mxu1  ;;  %v2261_v1 = vld [vmem:[#allocation2 + $0xb] sm:$0xff]  ;;  %v2262_v10 = vld [vmem:[#allocation2 + $0x13] sm:$0xff] }
 0x4de   :  { %v2253_v3 = vld [vmem:[#allocation2 + $0x9] sm:$0xff]  ;;  %v4721_v4 = vadd.f32 %v4720_v0, %v4719_v62  ;;  %v4722_v5 = vpop.f32.mrb[14].mxu1  ;;  %v5082_v6 = vpack.i.bf16 %v2261_v1, %v2260_v63  ;;  %v2254_v11 = vld [vmem:[#allocation2 + $0x11] sm:$0xff]  ;;  %v2255_v12 = vld [vmem:[#allocation2 + $0x19] sm:$0xf]  ;;  %v5092_v16 = vpack.i.bf16 %v2263_v8, %v2262_v10 }
 0x4df   :  { %v5087_v7 = vpack.i.bf16 %v2253_v3, %v2252_v2  ;;  %v4723_v9 = vpop.f32.mrb[15].mxu1  ;;  %v5097_v17 = vpack.i.bf16 %v2255_v12, %v2254_v11  ;;  %v2249_v62 = vld [vmem:[#allocation2 + $0x8] sm:$0xff]  ;;  %v2248_v1 = vld [vmem:[#allocation2] sm:$0xff]  ;;  %v2258_v15 = vld [vmem:[#allocation2 + $0x12] sm:$0xff] }
 0x4e0   :  { %v1381_v13 = vadd.f32 %v4721_v4, %v6176_v28  ;;  %5083 = vrot.lane.b32.xlu0 %v5082_v6, %s5694_s4  ;;  %v5343_v28 = vld [vmem:[%s6463_s5 + $0x54] ss:$8 sps:$4 sm:$0xff]   ;;  %v2256_v2 = vld [vmem:[#allocation2 + $0x2] sm:$0xff]  ;;  %v2257_v3 = vld [vmem:[#allocation2 + $0xa] sm:$0xff] }
 0x4e1   :  { %5088 = vrot.lane.b32.xlu1 %v5087_v7, %s5694_s4  ;;  %2926 = vmatprep.subr.bf16.mxu1 %v5343_v28  ;;  %v2250_v20 = vld [vmem:[#allocation2 + $0x10] sm:$0xff]  ;;  %v2251_v21 = vld [vmem:[#allocation2 + $0x18] sm:$0xf]  ;;  %v5356_v28 = vld [vmem:[%s6463_s5 + $0xa0] ss:$8 sps:$4 sm:$0xff]  }
 0x4e2   :  { %2927 = vmatpush1.bf16.msra.mxu1 %v5341_v29  ;;  %v5361_v29 = vld [vmem:[%s6463_s5 + $0xb4] ss:$8 sps:$4 sm:$0xff]  }
 0x4e3   :  { %2928 = vmatprep.subr.bf16.mxu1 %v5346_v30  ;;  %v5359_v30 = vld [vmem:[%s6463_s5 + $0xb0] ss:$8 sps:$4 sm:$0xff]  }
 0x4e4   :  { %5093 = vrot.lane.b32.xlu0 %v5092_v16, %s5694_s4  ;;  %v2259_v16 = vld [vmem:[#allocation2 + $0x1a] sm:$0xf] }
 0x4e5   :  { %5098 = vrot.lane.b32.xlu1 %v5097_v17, %s5694_s4 }
 0x4e6   :  { %2929 = vmatpush1.bf16.msra.mxu1 %v5344_v31  ;;  %v5364_v31 = vld [vmem:[%s6463_s5 + $0xc4] ss:$8 sps:$4 sm:$0xff]  }
 0x4e7   :  { %2930 = vmatprep.subr.bf16.mxu1 %v5349_v32  ;;  %v5362_v32 = vld [vmem:[%s6463_s5 + $0xc0] ss:$8 sps:$4 sm:$0xff]  }
 0x4ea   :  { %2931 = vmatpush1.bf16.msra.mxu1 %v5347_v35  ;;  %v5368_v35 = vld [vmem:[%s6463_s5 + $0xe0] ss:$8 sps:$4 sm:$0xff]  }
 0x4eb   :  { %2932 = vmatprep.subr.bf16.mxu1 %v5352_v38  ;;  %v5371_v38 = vld [vmem:[%s6463_s5 + $0xf0] ss:$8 sps:$4 sm:$0xff]  }
 0x4ee   :  { %2933 = vmatpush1.bf16.msra.mxu1 %v5350_v42  ;;  %v5423_v42 = vld [vmem:[#allocation11 + $0x80] sm:$0xff]  }
 0x4ef   :  { %2934 = vmatprep.subr.bf16.mxu1 %v5355_v43  ;;  %v5424_v43 = vld [vmem:[#allocation11 + $0xc8] sm:$0xff]  }
 0x4f2   :  { %2935 = vmatpush1.bf16.msra.mxu1 %v5353_v44  ;;  %v5425_v44 = vld [vmem:[#allocation11 + $0x88] sm:$0xff]  }
 0x4f3   :  { %2936 = vmatprep.subr.bf16.mxu1 %v5358_v26  ;;  %v5391_v26 = vld [vmem:[%s6463_s5 + $0x154] ss:$8 sps:$4 sm:$0xff]  }
 0x4f6   :  { %2937 = vmatpush1.bf16.msra.mxu1 %v5356_v28  ;;  %v5389_v28 = vld [vmem:[%s6463_s5 + $0x150] ss:$8 sps:$4 sm:$0xff]  }
 0x4f7   :  { %2938 = vmatprep.subr.bf16.mxu1 %v5361_v29  ;;  %v5394_v29 = vld [vmem:[%s6463_s5 + $0x164] ss:$8 sps:$4 sm:$0xff]  }
 0x4fa   :  { %2939 = vmatpush1.bf16.msra.mxu1 %v5359_v30  ;;  %v5392_v30 = vld [vmem:[%s6463_s5 + $0x160] ss:$8 sps:$4 sm:$0xff]  }
 0x4fb   :  { %2940 = vmatprep.subr.bf16.mxu1 %v5364_v31  ;;  %v5397_v31 = vld [vmem:[%s6463_s5 + $0x174] ss:$8 sps:$4 sm:$0xff]  }
 0x4fc   :  { %v4741_v33 = vpop.f32.mrb[16].mxu1 }
 0x4fd   :  { %v4742_v34 = vpop.f32.mrb[17].mxu1 }
 0x4fe   :  { %v4743_v36 = vadd.f32 %v4742_v34, %v4741_v33  ;;  %v4744_v37 = vpop.f32.mrb[18].mxu1  ;;  %2941 = vmatpush1.bf16.msra.mxu1 %v5362_v32  ;;  %v5367_v33 = vld [vmem:[%s6463_s5 + $0xd4] ss:$8 sps:$4 sm:$0xff]   ;;  %v5365_v34 = vld [vmem:[%s6463_s5 + $0xd0] ss:$8 sps:$4 sm:$0xff]  }
 0x4ff   :  { %v4745_v40 = vpop.f32.mrb[19].mxu1  ;;  %2942 = vmatprep.subr.bf16.mxu1 %v5367_v33  ;;  %v5373_v37 = vld [vmem:[%s6463_s5 + $0xf4] ss:$8 sps:$4 sm:$0xff]   ;;  %v5395_v32 = vld [vmem:[%s6463_s5 + $0x170] ss:$8 sps:$4 sm:$0xff]  }
 0x500   :  { %v1570_v41 = vadd.f32 %v4743_v36, %v1381_v13  ;;  %v5370_v36 = vld [vmem:[%s6463_s5 + $0xe4] ss:$8 sps:$4 sm:$0xff]  }
 0x501   :  { %v5376_v40 = vld [vmem:[%s6463_s5 + $0x104] ss:$8 sps:$4 sm:$0xff]  }
 0x502   :  { %2943 = vmatpush1.bf16.msra.mxu1 %v5365_v34  ;;  %v5400_v33 = vld [vmem:[%s6463_s5 + $0x184] ss:$8 sps:$4 sm:$0xff]   ;;  %v5398_v34 = vld [vmem:[%s6463_s5 + $0x180] ss:$8 sps:$4 sm:$0xff]  }
 0x503   :  { %2944 = vmatprep.subr.bf16.mxu1 %v5370_v36  ;;  %v5401_v36 = vld [vmem:[%s6463_s5 + $0x190] ss:$8 sps:$4 sm:$0xff]  }
 0x506   :  { %2945 = vmatpush1.bf16.msra.mxu1 %v5368_v35  ;;  %v5403_v35 = vld [vmem:[%s6463_s5 + $0x194] ss:$8 sps:$4 sm:$0xff]  }
 0x507   :  { %2946 = vmatprep.subr.bf16.mxu1 %v5373_v37  ;;  %v5406_v37 = vld [vmem:[%s6463_s5 + $0x1a4] ss:$8 sps:$4 sm:$0xff]  }
 0x50a   :  { %2947 = vmatpush1.bf16.msra.mxu1 %v5371_v38  ;;  %v5404_v38 = vld [vmem:[%s6463_s5 + $0x1a0] ss:$8 sps:$4 sm:$0xff]  }
 0x50b   :  { %2967 = vmatprep.subr.bf16.mxu1 %v5376_v40  ;;  %v5409_v40 = vld [vmem:[%s6463_s5 + $0x1b4] ss:$8 sps:$4 sm:$0xff]  }
 0x51c   :  { %v4763_v45 = vpop.f32.mrb[20].mxu1 }
 0x51d   :  { %v4764_v46 = vpop.f32.mrb[21].mxu1 }
 0x51e   :  { %v4765_v47 = vadd.f32 %v4764_v46, %v4763_v45  ;;  %v4766_v48 = vpop.f32.mrb[22].mxu1  ;;  %v5426_v45 = vld [vmem:[#allocation11 + $0xd0] sm:$0xff]  }
 0x51f   :  { %v4767_v49 = vpop.f32.mrb[23].mxu1  ;;  %v5427_v46 = vld [vmem:[#allocation11 + $0x90] sm:$0xff]   ;;  %v5431_v48 = vld [vmem:[#allocation11 + $0x98] sm:$0xff]  }
 0x520   :  { %v1755_v50 = vadd.f32 %v4765_v47, %v1570_v41  ;;  %v5422_v41 = vld [vmem:[#allocation11 + $0xc0] sm:$0xff]   ;;  %v5430_v47 = vld [vmem:[#allocation11 + $0xd8] sm:$0xff]  }
 0x521   :  { %4846 = vmatprep.subr.bf16.mxu0 %v5422_v41  ;;  %v5407_v41 = vld [vmem:[%s6463_s5 + $0x1b0] ss:$8 sps:$4 sm:$0xff]  }
 0x522   :  { %v1940_v51 = vadd.f32 %v6196_v39, %v1755_v50  ;;  %v4461_v50 = vld [vmem:[#allocation6] ss:$0 sm:$0xff] }
 0x53c   :  { %v4807_v52 = vpop.f32.mrb[24].mxu1 }
 0x53d   :  { %v4808_v53 = vpop.f32.mrb[25].mxu1 }
 0x53e   :  { %v4809_v54 = vadd.f32 %v4808_v53, %v4807_v52  ;;  %v4810_v55 = vpop.f32.mrb[26].mxu1 }
 0x53f   :  { %v4811_v56 = vpop.f32.mrb[27].mxu1 }
 0x540   :  { %v2125_v57 = vadd.f32 %v4809_v54, %v1940_v51 }
 0x542   :  { %2126 = vst [vmem:[#allocation5] sm:$0x1] %v2125_v57 }
 0x552   :  { %v5084_v58 = vpop.permute.xlu0 %5083 }
 0x553   :  { %v5089_v59 = vpop.permute.xlu1 %5088  ;;  %v5086_v60 = vunpack.i.h.bf16 %v5084_v58  ;;  %v5085_v61 = vunpack.i.l.bf16 %v5084_v58 }
 0x554   :  { %v5091_v63 = vunpack.i.h.bf16 %v5089_v59  ;;  %v5090_v0 = vunpack.i.l.bf16 %v5089_v59 }
 0x555   :  { %v2300_v5 = vsel %vm232_vm2, %v2256_v2, %v5085_v61  ;;  %v2301_v6 = vsel %vm232_vm2, %v2257_v3, %v5086_v60 }
 0x556   :  { %v2297_v4 = vsel %vm232_vm2, %v2249_v62, %v5091_v63  ;;  %v2296_v39 = vsel %vm232_vm2, %v2248_v1, %v5090_v0  ;;  %v5094_v8 = vpop.permute.xlu0 %5093  ;;  %v2305_v10 = vpack.c.bf16 %v2301_v6, %v2300_v5 }
 0x557   :  { %v2304_v7 = vpack.c.bf16 %v2297_v4, %v2296_v39  ;;  %v5099_v9 = vpop.permute.xlu1 %5098  ;;  %v5096_v11 = vunpack.i.h.bf16 %v5094_v8  ;;  %v5095_v12 = vunpack.i.l.bf16 %v5094_v8 }
 0x558   :  { %v5101_v13 = vunpack.i.h.bf16 %v5099_v9  ;;  %v5100_v14 = vunpack.i.l.bf16 %v5099_v9  ;;  %2475 = vmatprep.mubr.bf16.mxu0 %v2305_v10  ;;  %v5374_v10 = vld [vmem:[%s6463_s5 + $0x100] ss:$8 sps:$4 sm:$0xff]  }
 0x559   :  { %2476 = vmatmul.mubr.bf16.vlgmr.msra.gmra.mrb[20].mxu0 %v2304_v7  ;;  %v2302_v17 = vsel %vm232_vm2, %v2258_v15, %v5095_v12  ;;  %v2303_v18 = vsel %vm232_vm2, %v2259_v16, %v5096_v11  ;;  %v5379_v11 = vld [vmem:[%s6463_s5 + $0x114] ss:$8 sps:$4 sm:$0xff]  }
 0x55a   :  { %v2307_v19 = vpack.c.bf16 %v2303_v18, %v2302_v17  ;;  %v2298_v22 = vsel %vm232_vm2, %v2250_v20, %v5100_v14  ;;  %v2299_v23 = vsel %vm232_vm2, %v2251_v21, %v5101_v13  ;;  %4847 = vmatpush3.bf16.msra.mxu0 %v5423_v42  ;;  %v5377_v13 = vld [vmem:[%s6463_s5 + $0x110] ss:$8 sps:$4 sm:$0xff]   ;;  %v5382_v14 = vld [vmem:[%s6463_s5 + $0x124] ss:$8 sps:$4 sm:$0xff]   ;;  %v5380_v17 = vld [vmem:[%s6463_s5 + $0x120] ss:$8 sps:$4 sm:$0xff]  }
 0x55b   :  { %v2306_v24 = vpack.c.bf16 %v2299_v23, %v2298_v22  ;;  %4848 = vmatprep.subr.bf16.mxu0 %v5424_v43  ;;  %v5385_v20 = vld [vmem:[%s6463_s5 + $0x134] ss:$8 sps:$4 sm:$0xff]   ;;  %v5383_v22 = vld [vmem:[%s6463_s5 + $0x130] ss:$8 sps:$4 sm:$0xff]   ;;  %v5388_v23 = vld [vmem:[%s6463_s5 + $0x144] ss:$8 sps:$4 sm:$0xff]  }
 0x55c   :  { %2483 = vmatprep.mubr.bf16.mxu0 %v2307_v19  ;;  %v5412_v42 = vld [vmem:[%s6463_s5 + $0x1c4] ss:$8 sps:$4 sm:$0xff]   ;;  %v5410_v43 = vld [vmem:[%s6463_s5 + $0x1c0] ss:$8 sps:$4 sm:$0xff]  }
 0x55e   :  { %4849 = vmatpush3.bf16.msra.mxu0 %v5425_v44  ;;  %v5415_v44 = vld [vmem:[%s6463_s5 + $0x1d4] ss:$8 sps:$4 sm:$0xff]  }
 0x55f   :  { %4850 = vmatprep.subr.bf16.mxu0 %v5426_v45  ;;  %v5413_v45 = vld [vmem:[%s6463_s5 + $0x1d0] ss:$8 sps:$4 sm:$0xff]  }
 0x561   :  { %2484 = vmatmul.mubr.bf16.gmra.mrb[24].mxu0 %v2306_v24  ;;  %v5386_v24 = vld [vmem:[%s6463_s5 + $0x140] ss:$8 sps:$4 sm:$0xff]  }
 0x562   :  { %4851 = vmatpush3.bf16.msra.mxu0 %v5427_v46  ;;  %v5418_v46 = vld [vmem:[%s6463_s5 + $0x1e4] ss:$8 sps:$4 sm:$0xff]  }
 0x563   :  { %4852 = vmatprep.subr.bf16.mxu0 %v5430_v47  ;;  %v5416_v47 = vld [vmem:[%s6463_s5 + $0x1e0] ss:$8 sps:$4 sm:$0xff]  }
 0x566   :  { %4853 = vmatpush3.bf16.msra.mxu0 %v5431_v48  ;;  %v5421_v48 = vld [vmem:[%s6463_s5 + $0x1f4] ss:$8 sps:$4 sm:$0xff]  }
 0x62c   :  { %v4834_v49 = vpop.f32.mrb[20].mxu0 }
 0x62d   :  { %v4835_v51 = vpop.f32.mrb[21].mxu0 }
 0x62e   :  { %v4836_v52 = vadd.f32 %v4835_v51, %v4834_v49  ;;  %v4837_v53 = vpop.f32.mrb[22].mxu0  ;;  %v5419_v49 = vld [vmem:[%s6463_s5 + $0x1f0] ss:$8 sps:$4 sm:$0xff]   ;;  %s5700_s5 = smov [#allocation17]  }
 0x62f   :  { %v4838_v54 = vpop.f32.mrb[23].mxu0  ;;  %s4256_s1 = sshll.u32 %s5700_s5, 4  ;;  %s4257_s1 = int_to_ptr.vmem [resolvable:$true] %s4256_s1 }
 0x630   :  { %v2478_v55 = vadd.f32 %v4836_v52, %v4461_v50  ;;  %v4839_v56 = vadd.f32 %v4838_v54, %v4837_v53  ;;  %v5429_v54 = vld [vmem:[#allocation11 + $0x200] sm:$0xff]   ;;  %s5658_s13 = scalar_lea.vmem %s4257_s1, 32  ;;  %p5663_p7 = scmp.lt.s32.totalorder %s4257_s1, %s4257_s1 }
 0x631   :  { %p5659_p6 = scmp.ne.s32.totalorder %s4257_s1, %s5658_s13  ;;  %p5664_p8 = scmp.lt.s32.totalorder %s5658_s13, %s5658_s13 }
 0x632   :  { %v2492_v57 = vmax.f32 %v2478_v55, 0.0  ;;  %v2481_v58 = vadd.f32 %v4839_v56, %v4461_v50  ;;  %v5432_v56 = vld [vmem:[#allocation11 + $0x248] sm:$0xff]  }
 0x633   :  { %p5665_p9 = por %p5664_p8, %p5663_p7 }
 0x634   :  { %2496 = vst [vmem:[#allocation3] sm:$0xff] %v2492_v57  ;;  %v2493_v59 = vmax.f32 %v2481_v58, 0.0  ;;  %v4840_v60 = vpop.f32.mrb[24].mxu0 }
 0x635   :  { %v4841_v61 = vpop.f32.mrb[25].mxu0  ;;  %p5666_p10 = pnand %p5665_p9, %p5659_p6 }
 0x636   :  { %2497 = vst [vmem:[#allocation3 + $0x8] sm:$0xff] %v2493_v59  ;;  %v4842_v62 = vadd.f32 %v4841_v61, %v4840_v60  ;;  %v4843_v63 = vpop.f32.mrb[26].mxu0  ;;  %v2512_v0 = vpack.c.bf16 %v2493_v59, %v2492_v57  ;;  %v5433_v60 = vld [vmem:[#allocation11 + $0x208] sm:$0xff]   ;;  %v5434_v61 = vld [vmem:[#allocation11 + $0xe0] sm:$0xff]  }
 0x637   :  { %v4844_v1 = vpop.f32.mrb[27].mxu0  ;;  %4854 = vmatprep.subr.bf16.mxu0 %v5434_v61  ;;  %v5460_v61 = vld [vmem:[#allocation11 + $0x58] sm:$0xff]  }
 0x638   :  { %v2486_v2 = vadd.f32 %v4842_v62, %v4461_v50  ;;  %v4845_v3 = vadd.f32 %v4844_v1, %v4843_v63  ;;  %v5435_v62 = vld [vmem:[#allocation11 + $0xa0] sm:$0xff]   ;;  %v5436_v63 = vld [vmem:[#allocation11 + $0x250] sm:$0xff]   ;;  %v5438_v1 = vld [vmem:[#allocation11 + $0xe8] sm:$0xff]  }
 0x639   :  { %4855 = vmatpush3.bf16.msra.mxu0 %v5435_v62  ;;  %v5461_v62 = vld [vmem:[#allocation11 + $0x18] sm:$0xff]  }
 0x63a   :  { %v2494_v4 = vmax.f32 %v2486_v2, 0.0  ;;  %v2489_v39 = vadd.f32 %v4845_v3, %v4461_v50  ;;  %v5428_v50 = vld [vmem:[#allocation11 + $0x240] sm:$0xff]   ;;  %v5439_v2 = vld [vmem:[#allocation11 + $0xa8] sm:$0xff]   ;;  %v5440_v3 = vld [vmem:[#allocation11 + $0x258] sm:$0xff]   ;;  %4856 = vmatprep.subr.bf16.mxu0 %v5438_v1 }
 0x63b   :  { %v5464_v1 = vld [vmem:[#allocation11 + $0x68] sm:$0xff]  }
 0x63c   :  { %2498 = vst [vmem:[#allocation3 + $0x10] sm:$0xff] %v2494_v4  ;;  %v2495_v5 = vmax.f32 %v2489_v39, 0.0  ;;  %v5441_v4 = vld [vmem:[#allocation11 + $0x218] sm:$0xff]   ;;  %v5442_v39 = vld [vmem:[#allocation11 + $0xf0] sm:$0xff]  }
 0x63d   :  { %v2503_v6 = vld [vmem:[#allocation3 + $0x2] sm:$0xff]  ;;  %4857 = vmatpush3.bf16.msra.mxu0 %v5439_v2 }
 0x63e   :  { %2499 = vst [vmem:[#allocation3 + $0x18] sm:$0xf] %v2495_v5  ;;  %v2509_v19 = vld [vmem:[#allocation3 + $0x6] sm:$0xff]  ;;  %4858 = vmatprep.subr.bf16.mxu0 %v5442_v39  ;;  %v5465_v2 = vld [vmem:[#allocation11 + $0x28] sm:$0xff]   ;;  %v5468_v39 = vld [vmem:[#allocation11 + $0x78] sm:$0xff]  }
 0x63f   :  { %v2506_v53 = vld [vmem:[#allocation3 + $0x4] sm:$0xff] }
 0x640   :  { %v5443_v5 = vld [vmem:[#allocation11 + $0xb0] sm:$0xff]  }
 0x641   :  { %4859 = vmatpush3.bf16.msra.mxu0 %v5443_v5 }
 0x643   :  { %v2504_v7 = vld [vmem:[#allocation3 + $0xa] sm:$0xff]  ;;  %v2505_v8 = vld [vmem:[#allocation3 + $0x12] sm:$0x3f] }
 0x644   :  { %v2513_v9 = vpack.c.bf16 %v2504_v7, %v2503_v6  ;;  %v2517_v12 = vpack.c.bf16 %v2505_v8, %v2505_v8  ;;  %v2502_v15 = vld [vmem:[#allocation3 + $0x10] sm:$0x3f]  ;;  %v5444_v6 = vld [vmem:[#allocation11 + $0x260] sm:$0xff]  }
 0x645   :  { %v2510_v16 = vld [vmem:[#allocation3 + $0xe] sm:$0xff]  ;;  %v2516_v18 = vpack.c.bf16 %v2502_v15, %v2502_v15  ;;  %v2511_v52 = vld [vmem:[#allocation3 + $0x16] sm:$0x3f] }
 0x646   :  { %2948 = vmatprep.mubr.bf16.mxu1 %v2513_v9  ;;  %v2515_v21 = vpack.c.bf16 %v2510_v16, %v2509_v19  ;;  %v2507_v51 = vld [vmem:[#allocation3 + $0xc] sm:$0xff]  ;;  %v2519_v57 = vpack.c.bf16 %v2511_v52, %v2511_v52  ;;  %v2508_v58 = vld [vmem:[#allocation3 + $0x14] sm:$0x3f] }
 0x647   :  { %2949 = vmatmul.mubr.bf16.vlgmr.msra.gmra.mrb[28].mxu1 %v2512_v0  ;;  %v2514_v55 = vpack.c.bf16 %v2507_v51, %v2506_v53  ;;  %v2518_v59 = vpack.c.bf16 %v2508_v58, %v2508_v58  ;;  %v5437_v0 = vld [vmem:[#allocation11 + $0x210] sm:$0xff]   ;;  %v5445_v7 = vld [vmem:[#allocation11 + $0x220] sm:$0xff]   ;;  %v5446_v8 = vld [vmem:[#allocation11 + $0xf8] sm:$0xff]  }
 0x648   :  { %2968 = vmatpush1.bf16.msra.mxu1 %v5374_v10  ;;  %2958 = vmatprep.mubr.bf16.mxu1 %v2517_v12  ;;  %v5447_v9 = vld [vmem:[#allocation11 + $0xb8] sm:$0xff]   ;;  %v5448_v10 = vld [vmem:[#allocation11 + $0x268] sm:$0xff]   ;;  %v5450_v12 = vld [vmem:[#allocation11 + $0x40] sm:$0xff]  }
 0x649   :  { %2969 = vmatprep.subr.bf16.mxu1 %v5379_v11  ;;  %v5449_v11 = vld [vmem:[#allocation11 + $0x228] sm:$0xff]   ;;  %4860 = vmatprep.subr.bf16.mxu0 %v5446_v8  ;;  %v5456_v15 = vld [vmem:[#allocation11 + $0x278] sm:$0xff]   ;;  %v5470_v8 = vld [vmem:[#allocation11 + $0x140] sm:$0xff]  }
 0x64a   :  { %4861 = vmatpush3.bf16.msra.mxu0 %v5447_v9  ;;  %v5457_v16 = vld [vmem:[#allocation11 + $0x238] sm:$0xff]   ;;  %v5454_v51 = vld [vmem:[#allocation11 + $0x48] sm:$0xff]  }
 0x64b   :  { %4868 = vmatprep.subr.bf16.mxu0 %v5450_v12  ;;  %v5455_v53 = vld [vmem:[#allocation11 + $0x8] sm:$0xff]  }
 0x64c   :  { %2970 = vmatpush1.bf16.msra.mxu1 %v5377_v13  ;;  %v5452_v13 = vld [vmem:[#allocation11 + $0x270] sm:$0xff]   ;;  %v5472_v12 = vld [vmem:[#allocation11 + $0x148] sm:$0xff]  }
 0x64d   :  { %2971 = vmatprep.subr.bf16.mxu1 %v5382_v14  ;;  %v5453_v14 = vld [vmem:[#allocation11 + $0x230] sm:$0xff]  }
 0x64f   :  { %2959 = vmatmul.mubr.bf16.gmra.mrb[32].mxu1 %v2516_v18 }
 0x650   :  { %2972 = vmatpush1.bf16.msra.mxu1 %v5380_v17  ;;  %2999 = vmatprep.mubr.bf16.mxu1 %v2515_v21  ;;  %v2584_v17 = vld [vmem:[#allocation9] sm:$0x3] }
 0x651   :  { %2973 = vmatprep.subr.bf16.mxu1 %v5385_v20  ;;  %v2589_v18 = vrot.slane %v2584_v17, %v6131_v25  ;;  %v2593_v19 = vrot.slane %v2584_v17, %v6133_v27  ;;  %v5476_v17 = vld [vmem:[#allocation11 + $0x158] sm:$0xff]  }
 0x654   :  { %2974 = vmatpush1.bf16.msra.mxu1 %v5383_v22 }
 0x655   :  { %2975 = vmatprep.subr.bf16.mxu1 %v5388_v23 }
 0x658   :  { %2976 = vmatpush1.bf16.msra.mxu1 %v5386_v24 }
 0x659   :  { %2977 = vmatprep.subr.bf16.mxu1 %v5391_v26 }
 0x65c   :  { %2978 = vmatpush1.bf16.msra.mxu1 %v5389_v28 }
 0x65d   :  { %2979 = vmatprep.subr.bf16.mxu1 %v5394_v29 }
 0x660   :  { %2980 = vmatpush1.bf16.msra.mxu1 %v5392_v30 }
 0x661   :  { %2981 = vmatprep.subr.bf16.mxu1 %v5397_v31 }
 0x664   :  { %2982 = vmatpush1.bf16.msra.mxu1 %v5395_v32 }
 0x665   :  { %2983 = vmatprep.subr.bf16.mxu1 %v5400_v33 }
 0x668   :  { %2984 = vmatpush1.bf16.msra.mxu1 %v5398_v34 }
 0x669   :  { %2985 = vmatprep.subr.bf16.mxu1 %v5403_v35 }
 0x66c   :  { %2986 = vmatpush1.bf16.msra.mxu1 %v5401_v36 }
 0x66d   :  { %2987 = vmatprep.subr.bf16.mxu1 %v5406_v37 }
 0x670   :  { %2988 = vmatpush1.bf16.msra.mxu1 %v5404_v38 }
 0x671   :  { %2989 = vmatprep.subr.bf16.mxu1 %v5409_v40 }
 0x674   :  { %2990 = vmatpush1.bf16.msra.mxu1 %v5407_v41 }
 0x675   :  { %2991 = vmatprep.subr.bf16.mxu1 %v5412_v42 }
 0x678   :  { %2992 = vmatpush1.bf16.msra.mxu1 %v5410_v43 }
 0x679   :  { %2993 = vmatprep.subr.bf16.mxu1 %v5415_v44 }
 0x67c   :  { %2994 = vmatpush1.bf16.msra.mxu1 %v5413_v45 }
 0x67d   :  { %2995 = vmatprep.subr.bf16.mxu1 %v5418_v46 }
 0x680   :  { %2996 = vmatpush1.bf16.msra.mxu1 %v5416_v47 }
 0x681   :  { %2997 = vmatprep.subr.bf16.mxu1 %v5421_v48 }
 0x684   :  { %2998 = vmatpush1.bf16.msra.mxu1 %v5419_v49 }
 0x685   :  { %4934 = vmatprep.subr.bf16.mxu1 %v5428_v50  ;;  %v5451_v50 = vld [vmem:[#allocation11] sm:$0xff]  }
 0x687   :  { %3000 = vmatmul.mubr.bf16.vlgmr.msra.gmra.mrb[28].mxu1 %v2514_v55 }
 0x688   :  { %3009 = vmatprep.mubr.bf16.mxu1 %v2519_v57  ;;  %4935 = vmatpush3.bf16.msra.mxu1 %v5429_v54  ;;  %v5458_v54 = vld [vmem:[#allocation11 + $0x50] sm:$0xff]  }
 0x689   :  { %4936 = vmatprep.subr.bf16.mxu1 %v5432_v56 }
 0x68c   :  { %4937 = vmatpush3.bf16.msra.mxu1 %v5433_v60  ;;  %v5459_v60 = vld [vmem:[#allocation11 + $0x10] sm:$0xff]  }
 0x68d   :  { %4938 = vmatprep.subr.bf16.mxu1 %v5436_v63  ;;  %v5462_v63 = vld [vmem:[#allocation11 + $0x60] sm:$0xff]  }
 0x68f   :  { %3010 = vmatmul.mubr.bf16.gmra.mrb[32].mxu1 %v2518_v59 }
 0x690   :  { %4939 = vmatpush3.bf16.msra.mxu1 %v5437_v0  ;;  %v5463_v0 = vld [vmem:[#allocation11 + $0x20] sm:$0xff]  }
 0x691   :  { %4940 = vmatprep.subr.bf16.mxu1 %v5440_v3  ;;  %v5466_v3 = vld [vmem:[#allocation11 + $0x70] sm:$0xff]  }
 0x694   :  { %4941 = vmatpush3.bf16.msra.mxu1 %v5441_v4  ;;  %v5467_v4 = vld [vmem:[#allocation11 + $0x30] sm:$0xff]  }
 0x695   :  { %4942 = vmatprep.subr.bf16.mxu1 %v5444_v6  ;;  %v5469_v6 = vld [vmem:[#allocation11 + $0x38] sm:$0xff]  }
 0x698   :  { %4943 = vmatpush3.bf16.msra.mxu1 %v5445_v7 }
 0x699   :  { %4944 = vmatprep.subr.bf16.mxu1 %v5448_v10  ;;  %v5471_v10 = vld [vmem:[#allocation11 + $0x100] sm:$0xff]  }
 0x69c   :  { %4945 = vmatpush3.bf16.msra.mxu1 %v5449_v11 }
 0x69d   :  { %4946 = vmatprep.subr.bf16.mxu1 %v5452_v13 }
 0x6a0   :  { %4947 = vmatpush3.bf16.msra.mxu1 %v5453_v14  ;;  %v5473_v14 = vld [vmem:[#allocation11 + $0x108] sm:$0xff]  }
 0x6a1   :  { %4948 = vmatprep.subr.bf16.mxu1 %v5456_v15  ;;  %v5474_v15 = vld [vmem:[#allocation11 + $0x150] sm:$0xff]  }
 0x6a4   :  { %4949 = vmatpush3.bf16.msra.mxu1 %v5457_v16  ;;  %v5475_v16 = vld [vmem:[#allocation11 + $0x110] sm:$0xff]  }
 0x75a   :  { %v3001_v20 = vpop.f32.mrb[28].mxu1 }
 0x75b   :  { %v5029_v21 = vadd.f32 %v3001_v20, %v2589_v18  ;;  %v3003_v22 = vpop.f32.mrb[29].mxu1  ;;  %v5479_v20 = vld [vmem:[#allocation11 + $0x120] sm:$0xff]  }
 0x75c   :  { %v5030_v23 = vadd.f32 %v3003_v22, %v2593_v19  ;;  %v3005_v24 = vpop.f32.mrb[30].mxu1  ;;  %v5481_v22 = vld [vmem:[#allocation11 + $0x128] sm:$0xff]  }
 0x75d   :  { %v3018_v26 = vmax.f32 %v5029_v21, 0.0  ;;  %v5031_v28 = vadd.f32 %v3005_v24, %v2589_v18  ;;  %v3007_v29 = vpop.f32.mrb[31].mxu1  ;;  %v5480_v21 = vld [vmem:[#allocation11 + $0x168] sm:$0xff]   ;;  %v5483_v24 = vld [vmem:[#allocation11 + $0x130] sm:$0xff]  }
 0x75e   :  { %v3019_v30 = vmax.f32 %v5030_v23, 0.0  ;;  %v5032_v31 = vadd.f32 %v3007_v29, %v2593_v19  ;;  %v5482_v23 = vld [vmem:[#allocation11 + $0x170] sm:$0xff]   ;;  %v5485_v29 = vld [vmem:[#allocation11 + $0x138] sm:$0xff]  }
 0x75f   :  { %3024 = vst [vmem:[#allocation4] sm:$0xff] %v3018_v26  ;;  %v3020_v32 = vmax.f32 %v5031_v28, 0.0  ;;  %v5484_v26 = vld [vmem:[#allocation11 + $0x178] sm:$0xff]  }
 0x760   :  { %3025 = vst [vmem:[#allocation4 + $0x8] sm:$0xff] %v3019_v30  ;;  %v3021_v33 = vmax.f32 %v5032_v31, 0.0  ;;  %v5486_v31 = vld [vmem:[#allocation11 + $0x1c0] sm:$0xff]  }
 0x761   :  { %3026 = vst [vmem:[#allocation4 + $0x10] sm:$0xff] %v3020_v32 }
 0x762   :  { %3027 = vst [vmem:[#allocation4 + $0x18] sm:$0xff] %v3021_v33  ;;  %v3011_v34 = vpop.f32.mrb[32].mxu1  ;;  %v5487_v33 = vld [vmem:[#allocation11 + $0x180] sm:$0xff]  }
 0x763   :  { %v5033_v35 = vadd.f32 %v3011_v34, %v2589_v18  ;;  %v3013_v36 = vpop.f32.mrb[33].mxu1  ;;  %v5477_v18 = vld [vmem:[#allocation11 + $0x118] sm:$0xff]  }
 0x764   :  { %v5034_v37 = vadd.f32 %v3013_v36, %v2593_v19  ;;  %v3015_v38 = vpop.f32.mrb[34].mxu1  ;;  %v5478_v19 = vld [vmem:[#allocation11 + $0x160] sm:$0xff]  }
 0x765   :  { %v3022_v40 = vmax.f32 %v5033_v35, 0.0  ;;  %v3016_v41 = vpop.f32.mrb[35].mxu1  ;;  %v5488_v35 = vld [vmem:[#allocation11 + $0x1c8] sm:$0xff]   ;;  %v5490_v38 = vld [vmem:[#allocation11 + $0x1d0] sm:$0xff]  }
 0x766   :  { %v3023_v42 = vmax.f32 %v5034_v37, 0.0  ;;  %v5489_v37 = vld [vmem:[#allocation11 + $0x188] sm:$0xff]   ;;  %v5492_v41 = vld [vmem:[#allocation11 + $0x1d8] sm:$0xff]  }
 0x767   :  { %3028 = vst [vmem:[#allocation4 + $0x20] sm:$0x3f] %v3022_v40  ;;  %v3076_v43 = vld [vmem:[#allocation4 + $0x4] ss:$8 sm:$0x3] }
 0x768   :  { %v3030_v44 = vld [vmem:[#allocation4] ss:$8 sm:$0x3]  ;;  %3029 = vst [vmem:[#allocation4 + $0x28] sm:$0x3f] %v3023_v42  ;;  %v3081_v45 = vrot.slane %v3076_v43, %v6131_v25  ;;  %v3085_v46 = vrot.slane %v3076_v43, %v6133_v27  ;;  %v5493_v42 = vld [vmem:[#allocation11 + $0x198] sm:$0xff]  }
 0x769   :  { %v3039_v47 = vrot.slane %v3030_v44, %v6133_v27  ;;  %v3394_v5 = vld [vmem:[#allocation4 + $0x10] ss:$8 sm:$0x3]  ;;  %v3035_v7 = vrot.slane %v3030_v44, %v6131_v25  ;;  %v3577_v28 = vld [vmem:[#allocation4 + $0x14] ss:$8 sm:$0x3] }
 0x76a   :  { %v3088_v48 = vpack.c.bf16 %v3081_v45, %v3081_v45  ;;  %v3089_v49 = vpack.c.bf16 %v3085_v46, %v3085_v46  ;;  %v3403_v9 = vrot.slane %v3394_v5, %v6133_v27  ;;  %v3399_v30 = vrot.slane %v3394_v5, %v6131_v25  ;;  %v5491_v40 = vld [vmem:[#allocation11 + $0x190] sm:$0xff]   ;;  %v5494_v43 = vld [vmem:[#allocation11 + $0x1e0] sm:$0xff]   ;;  %v5496_v45 = vld [vmem:[#allocation11 + $0x1e8] sm:$0xff]  }
 0x76b   :  { %v3043_v52 = vpack.c.bf16 %v3039_v47, %v3039_v47  ;;  %v3042_v11 = vpack.c.bf16 %v3035_v7, %v3035_v7  ;;  %v3586_v32 = vrot.slane %v3577_v28, %v6133_v27  ;;  %v5495_v44 = vld [vmem:[#allocation11 + $0x1a0] sm:$0xff]   ;;  %v5497_v46 = vld [vmem:[#allocation11 + $0x1a8] sm:$0xff]   ;;  %v5498_v47 = vld [vmem:[#allocation11 + $0x1f0] sm:$0xff]  }
 0x76c   :  { %3250 = vmatprep.mubr.bf16.mxu0 %v3089_v49  ;;  %v3407_v13 = vpack.c.bf16 %v3403_v9, %v3403_v9  ;;  %v3406_v34 = vpack.c.bf16 %v3399_v30, %v3399_v30  ;;  %v5500_v49 = vld [vmem:[#allocation11 + $0x1f8] sm:$0xff]   ;;  %v5698_v9 = vmov 0.0  }
 0x76d   :  { %3251 = vmatmul.mubr.bf16.vlgmr.msra.gmra.mrb[28].mxu0 %v3088_v48  ;;  %v3590_v36 = vpack.c.bf16 %v3586_v32, %v3586_v32  ;;  %v5499_v48 = vld [vmem:[#allocation11 + $0x1b0] sm:$0xff]   ;;  %v5517_v5 = vld [vmem:[#allocation11 + $0x2b8] sm:$0xff]   ;;  %5003 = vmatprep.subr.bf16.mxu1 %v5698_v9 }
 0x76e   :  { %4869 = vmatpush3.bf16.msra.mxu0 %v5451_v50  ;;  %3386 = vmatprep.mubr.bf16.mxu0 %v3043_v52  ;;  %v3582_v52 = vrot.slane %v3577_v28, %v6131_v25 }
 0x76f   :  { %4870 = vmatprep.subr.bf16.mxu0 %v5454_v51  ;;  %v3760_v55 = vld [vmem:[#allocation4 + $0x20] ss:$8 sm:$0x3]  ;;  %v3943_v50 = vld [vmem:[#allocation4 + $0x24] ss:$8 sm:$0x3] }
 0x770   :  { %v3765_v56 = vrot.slane %v3760_v55, %v6131_v25  ;;  %v3769_v57 = vrot.slane %v3760_v55, %v6133_v27  ;;  %v5501_v51 = vld [vmem:[#allocation11 + $0x1b8] sm:$0xff]   ;;  %v5503_v55 = vld [vmem:[#allocation11 + $0x280] sm:$0xff]  }
 0x772   :  { %4871 = vmatpush3.bf16.msra.mxu0 %v5455_v53  ;;  %v3772_v58 = vpack.c.bf16 %v3765_v56, %v3765_v56  ;;  %v3773_v59 = vpack.c.bf16 %v3769_v57, %v3769_v57  ;;  %v5502_v53 = vld [vmem:[#allocation11 + $0x2c0] sm:$0xff]   ;;  %v3589_v56 = vpack.c.bf16 %v3582_v52, %v3582_v52  ;;  %v5504_v57 = vld [vmem:[#allocation11 + $0x2c8] sm:$0xff]  }
 0x773   :  { %4872 = vmatprep.subr.bf16.mxu0 %v5458_v54  ;;  %v3952_v54 = vrot.slane %v3943_v50, %v6133_v27  ;;  %v5510_v27 = vld [vmem:[#allocation11 + $0x2e0] sm:$0xff]  }
 0x774   :  { %3934 = vmatprep.mubr.bf16.mxu1 %v3773_v59  ;;  %v5505_v59 = vld [vmem:[#allocation11 + $0x288] sm:$0xff]  }
 0x775   :  { %3935 = vmatmul.mubr.bf16.vlgmr.msra.gmra.mrb[36].mxu1 %v3772_v58  ;;  %v3956_v58 = vpack.c.bf16 %v3952_v54, %v3952_v54  ;;  %v4638_v54 = vld [vmem:[#allocation12] ss:$0 sm:$0xff] }
 0x776   :  { %4873 = vmatpush3.bf16.msra.mxu0 %v5459_v60  ;;  %v5506_v60 = vld [vmem:[#allocation11 + $0x2d0] sm:$0xff]   ;;  %5019 = vmatprep.mubr.msk.bf16.mxu1 %vm5699_vm4, %v5698_v9 }
 0x777   :  { %4874 = vmatprep.subr.bf16.mxu0 %v5460_v61  ;;  %v5507_v61 = vld [vmem:[#allocation11 + $0x290] sm:$0xff]  }
 0x77a   :  { %4875 = vmatpush3.bf16.msra.mxu0 %v5461_v62  ;;  %v5508_v62 = vld [vmem:[#allocation11 + $0x2d8] sm:$0xff]  }
 0x77b   :  { %4876 = vmatprep.subr.bf16.mxu0 %v5462_v63  ;;  %v5509_v63 = vld [vmem:[#allocation11 + $0x298] sm:$0xff]  }
 0x77e   :  { %4877 = vmatpush3.bf16.msra.mxu0 %v5463_v0  ;;  %v5511_v0 = vld [vmem:[#allocation11 + $0x2a0] sm:$0xff]  }
 0x77f   :  { %4878 = vmatprep.subr.bf16.mxu0 %v5464_v1  ;;  %v5512_v1 = vld [vmem:[#allocation11 + $0x2e8] sm:$0xff]  }
 0x782   :  { %4879 = vmatpush3.bf16.msra.mxu0 %v5465_v2  ;;  %v5513_v2 = vld [vmem:[#allocation11 + $0x2a8] sm:$0xff]  }
 0x783   :  { %4880 = vmatprep.subr.bf16.mxu0 %v5466_v3  ;;  %v5514_v3 = vld [vmem:[#allocation11 + $0x2f0] sm:$0xff]  }
 0x786   :  { %4881 = vmatpush3.bf16.msra.mxu0 %v5467_v4  ;;  %v5515_v4 = vld [vmem:[#allocation11 + $0x2b0] sm:$0xff]  }
 0x787   :  { %4882 = vmatprep.subr.bf16.mxu0 %v5468_v39  ;;  %v5516_v39 = vld [vmem:[#allocation11 + $0x2f8] sm:$0xff]  }
 0x78a   :  { %4883 = vmatpush3.bf16.msra.mxu0 %v5469_v6  ;;  %v3948_v6 = vrot.slane %v3943_v50, %v6131_v25 }
 0x78b   :  { %4890 = vmatprep.subr.bf16.mxu0 %v5470_v8  ;;  %v5518_v8 = vld [vmem:[#allocation14] sm:$0xff]  }
 0x78c   :  { %v3955_v7 = vpack.c.bf16 %v3948_v6, %v3948_v6  ;;  %5004 = vmatpush3.bf16.msra.mxu1 %v5518_v8 }
 0x78d   :  { %3387 = vmatmul.mubr.bf16.vlgmr.msra.gmra.mrb[32].mxu0 %v3042_v11  ;;  %5005 = vmatprep.subr.bf16.mxu1 %v5698_v9  ;;  %v5520_v11 = vld [vmem:[#allocation14 + $0x10] sm:$0xff]  }
 0x78e   :  { %4891 = vmatpush3.bf16.msra.mxu0 %v5471_v10  ;;  %3568 = vmatprep.mubr.bf16.mxu0 %v3407_v13  ;;  %v5519_v10 = vld [vmem:[#allocation14 + $0x8] sm:$0xff]   ;;  %v5521_v13 = vld [vmem:[#allocation14 + $0x18] sm:$0xff]  }
 0x78f   :  { %4892 = vmatprep.subr.bf16.mxu0 %v5472_v12 }
 0x790   :  { %5006 = vmatpush3.bf16.msra.mxu1 %v5519_v10 }
 0x791   :  { %5007 = vmatprep.subr.bf16.mxu1 %v5698_v9 }
 0x792   :  { %4893 = vmatpush3.bf16.msra.mxu0 %v5473_v14 }
 0x793   :  { %4894 = vmatprep.subr.bf16.mxu0 %v5474_v15 }
 0x794   :  { %5008 = vmatpush3.bf16.msra.mxu1 %v5520_v11 }
 0x795   :  { %5009 = vmatprep.subr.bf16.mxu1 %v5698_v9 }
 0x796   :  { %4895 = vmatpush3.bf16.msra.mxu0 %v5475_v16 }
 0x797   :  { %4896 = vmatprep.subr.bf16.mxu0 %v5476_v17  ;;  %v5522_v17 = vld [vmem:[#allocation14 + $0x20] sm:$0xff]  }
 0x798   :  { %5010 = vmatpush3.bf16.msra.mxu1 %v5521_v13 }
 0x799   :  { %5011 = vmatprep.subr.bf16.mxu1 %v5698_v9 }
 0x79a   :  { %4897 = vmatpush3.bf16.msra.mxu0 %v5477_v18  ;;  %v5523_v18 = vld [vmem:[#allocation14 + $0x28] sm:$0xff]  }
 0x79b   :  { %4898 = vmatprep.subr.bf16.mxu0 %v5478_v19 }
 0x79c   :  { %5012 = vmatpush3.bf16.msra.mxu1 %v5522_v17 }
 0x79d   :  { %5013 = vmatprep.subr.bf16.mxu1 %v5698_v9 }
 0x79e   :  { %4899 = vmatpush3.bf16.msra.mxu0 %v5479_v20 }
 0x79f   :  { %4900 = vmatprep.subr.bf16.mxu0 %v5480_v21 }
 0x7a0   :  { %5014 = vmatpush3.bf16.msra.mxu1 %v5523_v18 }
 0x7a1   :  { %5015 = vmatprep.subr.bf16.mxu1 %v5698_v9 }
 0x7a2   :  { %4901 = vmatpush3.bf16.msra.mxu0 %v5481_v22 }
 0x7a3   :  { %4902 = vmatprep.subr.bf16.mxu0 %v5482_v23  ;;  %v5524_v23 = vld [vmem:[#allocation14 + $0x30] sm:$0xff]  }
 0x7a4   :  { %5016 = vmatpush3.bf16.msra.mxu1 %v5524_v23 }
 0x7a5   :  { %5017 = vmatprep.subr.bf16.mxu1 %v5698_v9 }
 0x7a6   :  { %4903 = vmatpush3.bf16.msra.mxu0 %v5483_v24 }
 0x7a7   :  { %4904 = vmatprep.subr.bf16.mxu0 %v5484_v26  ;;  %v5525_v26 = vld [vmem:[#allocation14 + $0x38] sm:$0xff]  }
 0x7a8   :  { %5018 = vmatpush3.bf16.msra.mxu1 %v5525_v26 }
 0x7aa   :  { %4905 = vmatpush3.bf16.msra.mxu0 %v5485_v29 }
 0x7ab   :  { %4912 = vmatprep.subr.bf16.mxu0 %v5486_v31 }
 0x7ad   :  { %3569 = vmatmul.mubr.bf16.vlgmr.msra.gmra.mrb[36].mxu0 %v3406_v34 }
 0x7ae   :  { %4913 = vmatpush3.bf16.msra.mxu0 %v5487_v33  ;;  %3751 = vmatprep.mubr.bf16.mxu0 %v3590_v36 }
 0x7af   :  { %4914 = vmatprep.subr.bf16.mxu0 %v5488_v35 }
 0x7b2   :  { %4915 = vmatpush3.bf16.msra.mxu0 %v5489_v37 }
 0x7b3   :  { %4916 = vmatprep.subr.bf16.mxu0 %v5490_v38 }
 0x7b6   :  { %4917 = vmatpush3.bf16.msra.mxu0 %v5491_v40 }
 0x7b7   :  { %4918 = vmatprep.subr.bf16.mxu0 %v5492_v41 }
 0x7ba   :  { %4919 = vmatpush3.bf16.msra.mxu0 %v5493_v42 }
 0x7bb   :  { %4920 = vmatprep.subr.bf16.mxu0 %v5494_v43 }
 0x7be   :  { %4921 = vmatpush3.bf16.msra.mxu0 %v5495_v44 }
 0x7bf   :  { %4922 = vmatprep.subr.bf16.mxu0 %v5496_v45 }
 0x7c2   :  { %4923 = vmatpush3.bf16.msra.mxu0 %v5497_v46 }
 0x7c3   :  { %4924 = vmatprep.subr.bf16.mxu0 %v5498_v47 }
 0x7c6   :  { %4925 = vmatpush3.bf16.msra.mxu0 %v5499_v48 }
 0x7c7   :  { %4926 = vmatprep.subr.bf16.mxu0 %v5500_v49 }
 0x7ca   :  { %4927 = vmatpush3.bf16.msra.mxu0 %v5501_v51 }
 0x7cb   :  { %4956 = vmatprep.subr.bf16.mxu0 %v5502_v53 }
 0x7cd   :  { %3752 = vmatmul.mubr.bf16.vlgmr.msra.gmra.mrb[40].mxu0 %v3589_v56 }
 0x7ce   :  { %4957 = vmatpush3.bf16.msra.mxu0 %v5503_v55  ;;  %4117 = vmatprep.mubr.bf16.mxu0 %v3956_v58 }
 0x7cf   :  { %4958 = vmatprep.subr.bf16.mxu0 %v5504_v57 }
 0x7d2   :  { %4959 = vmatpush3.bf16.msra.mxu0 %v5505_v59  ;;  %v4639_v59 = vld [vmem:[#allocation15] ss:$0 sm:$0xff] }
 0x7d3   :  { %4960 = vmatprep.subr.bf16.mxu0 %v5506_v60 }
 0x7d6   :  { %4961 = vmatpush3.bf16.msra.mxu0 %v5507_v61 }
 0x7d7   :  { %4962 = vmatprep.subr.bf16.mxu0 %v5508_v62 }
 0x7da   :  { %4963 = vmatpush3.bf16.msra.mxu0 %v5509_v63 }
 0x7db   :  { %4964 = vmatprep.subr.bf16.mxu0 %v5510_v27 }
 0x7de   :  { %4965 = vmatpush3.bf16.msra.mxu0 %v5511_v0 }
 0x7df   :  { %4966 = vmatprep.subr.bf16.mxu0 %v5512_v1 }
 0x7e2   :  { %4967 = vmatpush3.bf16.msra.mxu0 %v5513_v2 }
 0x7e3   :  { %4968 = vmatprep.subr.bf16.mxu0 %v5514_v3 }
 0x7e6   :  { %4969 = vmatpush3.bf16.msra.mxu0 %v5515_v4 }
 0x7e7   :  { %4970 = vmatprep.subr.bf16.mxu0 %v5516_v39 }
 0x7ea   :  { %4971 = vmatpush3.bf16.msra.mxu0 %v5517_v5 }
 0x7ed   :  { %4118 = vmatmul.mubr.bf16.vlgmr.msra.gmra.mrb[44].mxu0 %v3955_v7 }
 0x840   :  { %v4862_v12 = vpop.f32.mrb[28].mxu0 }
 0x841   :  { %v4863_v14 = vpop.f32.mrb[29].mxu0 }
 0x842   :  { %v4864_v15 = vadd.f32 %v4863_v14, %v4862_v12  ;;  %v4865_v25 = vpop.f32.mrb[30].mxu0 }
 0x843   :  { %v4866_v16 = vpop.f32.mrb[31].mxu0 }
 0x848   :  { %v4950_v19 = vpop.f32.mrb[36].mxu1 }
 0x849   :  { %v4951_v20 = vpop.f32.mrb[37].mxu1 }
 0x84a   :  { %v4952_v21 = vadd.f32 %v4951_v20, %v4950_v19  ;;  %v4953_v22 = vpop.f32.mrb[38].mxu1 }
 0x84b   :  { %v4954_v24 = vpop.f32.mrb[39].mxu1 }
 0x860   :  { %v4884_v28 = vpop.f32.mrb[32].mxu0 }
 0x861   :  { %v4885_v29 = vpop.f32.mrb[33].mxu0 }
 0x862   :  { %v4886_v30 = vadd.f32 %v4885_v29, %v4884_v28  ;;  %v4887_v31 = vpop.f32.mrb[34].mxu0 }
 0x863   :  { %v4888_v32 = vpop.f32.mrb[35].mxu0 }
 0x864   :  { %v3389_v33 = vadd.f32 %v4886_v30, %v4864_v15 }
 0x880   :  { %v4906_v34 = vpop.f32.mrb[36].mxu0 }
 0x881   :  { %v4907_v35 = vpop.f32.mrb[37].mxu0 }
 0x882   :  { %v4908_v36 = vadd.f32 %v4907_v35, %v4906_v34  ;;  %v4909_v37 = vpop.f32.mrb[38].mxu0 }
 0x883   :  { %v4910_v38 = vpop.f32.mrb[39].mxu0 }
 0x884   :  { %v3576_v40 = vadd.f32 %v4908_v36, %v3389_v33 }
 0x8a0   :  { %v4928_v41 = vpop.f32.mrb[40].mxu0 }
 0x8a1   :  { %v4929_v42 = vpop.f32.mrb[41].mxu0 }
 0x8a2   :  { %v4930_v43 = vadd.f32 %v4929_v42, %v4928_v41  ;;  %v4931_v44 = vpop.f32.mrb[42].mxu0 }
 0x8a3   :  { %v4932_v45 = vpop.f32.mrb[43].mxu0 }
 0x8a4   :  { %v3759_v46 = vadd.f32 %v4930_v43, %v3576_v40 }
 0x8a6   :  { %v3942_v47 = vadd.f32 %v4952_v21, %v3759_v46 }
 0x8c0   :  { %v4972_v48 = vpop.f32.mrb[44].mxu0 }
 0x8c1   :  { %v4973_v49 = vpop.f32.mrb[45].mxu0 }
 0x8c2   :  { %v4974_v50 = vadd.f32 %v4973_v49, %v4972_v48  ;;  %v4975_v51 = vpop.f32.mrb[46].mxu0 }
 0x8c3   :  { %v4976_v52 = vpop.f32.mrb[47].mxu0 }
 0x8c4   :  { %v4125_v53 = vadd.f32 %v4974_v50, %v3942_v47 }
 0x8c6   :  { %4126 = vst [vmem:[#allocation5 + $0x1] sm:$0x1] %v4125_v53 }
 0x8cd   :  { %v4127_v55 = vld [vmem:[#allocation5] sm:$0x3] }
 0x8ce   :  { %v4135_v56 = vadd.f32 %v4638_v54, %v4127_v55 }
 0x8d0   :  { %v4136_v57 = vmax.f32 %v4135_v56, 0.0 }
 0x8d2   :  { %v4137_v58 = vpack.c.bf16 %v4136_v57, %v4136_v57 }
 0x8d4   :  { %5020 = vmatmul.mubr.bf16.vlgmr.msra.gmra.mrb[40].mxu1 %v4137_v58 }
 0x9a7   :  { %v4243_v60 = vpop.f32.mrb[40].mxu1 }
 0x9a8   :  { %v4244_v61 = vadd.f32 %v4639_v59, %v4243_v60  ;;  %v5021_v62 = vpop.f32.mrb[41].mxu1 }
 0x9a9   :  { %v4246_v63 = vpop.f32.mrb[42].mxu1 }
 0x9aa   :  { %4249 = vst [vmem:[#allocation17] sm:$0x3] %v4244_v61  ;;  %v5022_v27 = vpop.f32.mrb[43].mxu1 }
 0x9ab   :  { %5669 = shalt.err (!%p5666_p10)
}
 0x9ac   :  { %s5670_s17 = scalar_lea.hbm %s6469_s11, 32 }
 0x9ad   :  { %p5671_p11 = scmp.ne.s32.totalorder %s6469_s11, %s5670_s17  ;;  %p5674_p12 = scmp.lt.u32.totalorder %s5670_s17, %s6469_s11 }
 0x9af   :  { %p5676_p13 = pnand %p5674_p12, %p5671_p11 }
 0x9b1   :  { %5679 = shalt.err (!%p5676_p13)
}
 0x9b2   :  { %4259 = dma.vmem_to_hbm [thread:$0]  %s4257_s1, 32, %s6469_s11, [#allocation8]  }
 0x9b3   :  { %5688 = dma.done.wait [#allocation8], 32  }
 0x9b4   :  { %5689 = vsyncadd [#allocation8], 4294967264 }
 0x9b5   :  { %4263 = vsyncpa [#allocation7], 1 }
 0x9b6   :  { %4264 = vsyncpa [#allocation10], 1 }
 0x9b7   :  { %4265 = vsyncpa [#allocation13], 1 }
 0x9b8   :  { %4266 = vsyncpa [#allocation16], 1 }
 0x9b9   :  { %4267 = vsyncpa [#allocation8], 1 }

</bundles_post_ra>
